<compile_context>
chip_gen: v6e
topology: v6e:2x2x1
jax: 0.10.0
libtpu: 0.0.40
codegen_flags: <defaults>
</compile_context>

<pallas_src>
import numpy as np
import jax
import jax.numpy as jnp
from jax.experimental import pallas as pl
from jax.experimental.pallas import tpu as pltpu

KERNEL_SIZE = 3
TOLERANCE = 0.08
SIGMA = 5.0
ITERATIONS = 10


def _round_up(x, m):
    return ((x + m - 1) // m) * m


# ----------------------------------------------------------------------------
# Glue (plain JAX): weight-matrix precomputation.  This happens in
# BilateralProxyBlur.__init__, i.e. it is NOT part of the forward hot path.
# ----------------------------------------------------------------------------
def compute_bilateral_weights(ref_image, kernel_size=KERNEL_SIZE,
                              tolerance=TOLERANCE, sigma=SIGMA):
    """ref_image: (C_ref, H, W) float32 -> weights (K*K, H, W), normalized over K*K."""
    _, h, w = ref_image.shape
    p = kernel_size // 2
    padded = jnp.pad(ref_image, ((0, 0), (p, p), (p, p)))
    patches = []
    for ky in range(kernel_size):
        for kx in range(kernel_size):
            patches.append(padded[:, ky:ky + h, kx:kx + w])
    unfolded = jnp.stack(patches, axis=1)                     # (C_ref, K*K, H, W)
    diff = unfolded - ref_image[:, None]                      # (C_ref, K*K, H, W)
    color_dist_sq = jnp.sum(diff ** 2, axis=0)                # (K*K, H, W)
    color_w = jnp.exp(-color_dist_sq / (2.0 * tolerance ** 2))
    offs = jnp.arange(kernel_size, dtype=jnp.float32) - p
    spatial_sq = offs[:, None] ** 2 + offs[None, :] ** 2      # (K, K)
    spatial_w = jnp.exp(-spatial_sq / (2.0 * sigma ** 2)).reshape(kernel_size ** 2)
    wts = color_w * spatial_w[:, None, None]                  # (K*K, H, W)
    wts = wts / jnp.sum(wts, axis=0, keepdims=True)
    return wts.astype(jnp.float32)


# ----------------------------------------------------------------------------
# Pallas kernel: iterated weighted-neighborhood blur + sigmoid (forward hot path).
# ----------------------------------------------------------------------------
def bilateral_raster_forward(image, weights, *, kernel_size=KERNEL_SIZE,
                             iterations=ITERATIONS):
    """image: (C, H, W) f32 learnable raster; weights: (K*K, H, W) f32.
    Returns sigmoid(blur^iterations(image)), shape (C, H, W)."""
    c, h, w = image.shape
    kk = weights.shape[0]
    assert kk == kernel_size * kernel_size
    p = kernel_size // 2

    # Pad the plane so (a) sublane/lane dims are natively tiled (8, 128) and
    # (b) there are >= p zero rows/cols for rolls to wrap into.  With the weights
    # zero in the pad region, the pad stays exactly zero across all iterations,
    # which reproduces the conv zero-padding with no boundary masks at all.
    hpad = _round_up(h + p, 8)
    wpad = _round_up(w + p, 128)

    img_p = jnp.pad(image.astype(jnp.float32),
                    ((0, 0), (0, hpad - h), (0, wpad - w)))
    # NOTE: in the real module this weight padding would be done once in __init__.
    wts_p = jnp.pad(weights.astype(jnp.float32),
                    ((0, 0), (0, hpad - h), (0, wpad - w)))

    def kernel(img_ref, w_ref, out_ref):
        # img_ref: (Hpad, Wpad)        one channel of the learnable image (squeezed block)
        # w_ref  : (K*K, Hpad, Wpad)   bilateral weights, single-buffered VMEM, DMA'd once
        # out_ref: (Hpad, Wpad)
        cur = img_ref[...]
        for _ in range(iterations):                      # fully unrolled (static)
            acc = jnp.zeros((hpad, wpad), jnp.float32)
            for ky in range(kernel_size):                # 3x3 taps fully unrolled
                dy = ky - p
                # sublane shift (XLU); wrap lands in the zero pad rows
                nb_row = cur if dy == 0 else pltpu.roll(cur, (-dy) % hpad, axis=0)
                for kx in range(kernel_size):
                    dx = kx - p
                    # lane shift (XLU); wrap lands in the zero pad columns
                    nb = nb_row if dx == 0 else pltpu.roll(nb_row, (-dx) % wpad, axis=1)
                    # per-tap weight load from VMEM (no (K*K,H,W) register residency)
                    acc = acc + nb * w_ref[ky * kernel_size + kx]
            cur = acc
        # sigmoid(x) = 1 / (1 + exp(-x)); exp and approx reciprocal both go to the EUP.
        out_ref[...] = pl.reciprocal(1.0 + jnp.exp(-cur),
                                     approx=True).astype(out_ref.dtype)

    out_p = pl.pallas_call(
        kernel,
        out_shape=jax.ShapeDtypeStruct((c, hpad, wpad), jnp.float32),
        grid_spec=pltpu.PrefetchScalarGridSpec(
            num_scalar_prefetch=0,
            grid=(c,),
            in_specs=[
                # per-channel image plane; leading dim squeezed -> kernel sees (Hpad, Wpad)
                pl.BlockSpec((None, hpad, wpad), lambda ci: (ci, 0, 0)),
                # constant weights: whole array resident in VMEM, single buffer, one DMA
                pl.BlockSpec(memory_space=pltpu.MemorySpace.VMEM),
            ],
            out_specs=pl.BlockSpec((None, hpad, wpad), lambda ci: (ci, 0, 0)),
        ),
        compiler_params=pltpu.CompilerParams(
            dimension_semantics=("parallel",),
        ),
    )(img_p, wts_p)

    return out_p[:, :h, :w].astype(image.dtype)


# ----------------------------------------------------------------------------
# Pure-JAX reference (correctness check only).
# ----------------------------------------------------------------------------
def reference_forward(image, weights, kernel_size=KERNEL_SIZE, iterations=ITERATIONS):
    c, h, w = image.shape
    p = kernel_size // 2
    cur = image
    for _ in range(iterations):
        padded = jnp.pad(cur, ((0, 0), (p, p), (p, p)))
        acc = jnp.zeros_like(cur)
        for ky in range(kernel_size):
            for kx in range(kernel_size):
                acc = acc + padded[:, ky:ky + h, kx:kx + w] * \
                    weights[ky * kernel_size + kx][None]
        cur = acc
    return 1.0 / (1.0 + jnp.exp(-cur))


if __name__ == "__main__":
    C, H, W = 3, 16, 16

    key = jax.random.PRNGKey(0)
    k_img, k_ref = jax.random.split(key)

    # nn.Parameter(torch.randn(num_channels, height, width)) -> deterministic normal init
    learnable_image = jax.random.normal(k_img, (C, H, W), dtype=jnp.float32)
    # bilateral_blur.image : reference RGB image guiding the blur (defines H, W)
    reference_image = jax.random.uniform(k_ref, (3, H, W), dtype=jnp.float32)

    # __init__-time precompute (BilateralProxyBlur weights)
    weights = compute_bilateral_weights(reference_image)

    # forward() via Pallas kernel
    out = bilateral_raster_forward(learnable_image, weights)
    out = jax.block_until_ready(out)

    assert out.shape == (C, H, W)
    ref = reference_forward(learnable_image, weights)
    # slightly loose tolerance: final reciprocal uses the EUP approximate rcp
    np.testing.assert_allclose(np.asarray(out), np.asarray(ref), atol=2e-3, rtol=2e-3)

    print("KERNEL_OK")
</pallas_src>

<mosaic_0001>
module attributes {stable_mosaic.version = 11 : i64} {
  func.func @kernel(%arg0: i32, %arg1: memref<1x24x128xf32, #tpu.memory_space<vmem>>, %arg2: memref<9x24x128xf32, #tpu.memory_space<vmem>>, %arg3: memref<1x24x128xf32, #tpu.memory_space<vmem>>) attributes {dimension_semantics = [#tpu.dimension_semantics<parallel>], iteration_bounds = array<i64: 3>, scalar_prefetch = 0 : i64, scratch_operands = 0 : i64, tpu.core_type = #tpu.core_type<tc>, window_params = [{transform_indices = @transform_0, window_bounds = array<i64: 1, 24, 128>}, {pipeline_mode = #tpu.pipeline_mode<synchronous>, transform_indices = @transform_1, window_bounds = array<i64: 9, 24, 128>}, {transform_indices = @transform_2, window_bounds = array<i64: 1, 24, 128>}]} {
    %c0 = arith.constant 0 : index
    %c0_0 = arith.constant 0 : index
    %c0_1 = arith.constant 0 : index
    %0 = vector.load %arg1[%c0, %c0_0, %c0_1] : memref<1x24x128xf32, #tpu.memory_space<vmem>>, vector<1x24x128xf32>
    %1 = vector.shape_cast %0 : vector<1x24x128xf32> to vector<24x128xf32>
    %cst = arith.constant 0.000000e+00 : f32
    %2 = vector.broadcast %cst : f32 to vector<24x128xf32>
    %c1_i32 = arith.constant 1 : i32
    %3 = tpu.dynamic_rotate %1 by %c1_i32 dim 0 : vector<24x128xf32>, i32 -> vector<24x128xf32>
    %c1_i32_2 = arith.constant 1 : i32
    %4 = tpu.dynamic_rotate %3 by %c1_i32_2 dim 1 : vector<24x128xf32>, i32 -> vector<24x128xf32>
    %c0_3 = arith.constant 0 : index
    %c0_4 = arith.constant 0 : index
    %c0_5 = arith.constant 0 : index
    %5 = vector.load %arg2[%c0_3, %c0_4, %c0_5] : memref<9x24x128xf32, #tpu.memory_space<vmem>>, vector<1x24x128xf32>
    %6 = vector.shape_cast %5 : vector<1x24x128xf32> to vector<24x128xf32>
    %7 = arith.mulf %4, %6 : vector<24x128xf32>
    %8 = arith.addf %2, %7 : vector<24x128xf32>
    %c1 = arith.constant 1 : index
    %c0_6 = arith.constant 0 : index
    %c0_7 = arith.constant 0 : index
    %9 = vector.load %arg2[%c1, %c0_6, %c0_7] : memref<9x24x128xf32, #tpu.memory_space<vmem>>, vector<1x24x128xf32>
    %10 = vector.shape_cast %9 : vector<1x24x128xf32> to vector<24x128xf32>
    %11 = arith.mulf %3, %10 : vector<24x128xf32>
    %12 = arith.addf %8, %11 : vector<24x128xf32>
    %c127_i32 = arith.constant 127 : i32
    %13 = tpu.dynamic_rotate %3 by %c127_i32 dim 1 : vector<24x128xf32>, i32 -> vector<24x128xf32>
    %c2 = arith.constant 2 : index
    %c0_8 = arith.constant 0 : index
    %c0_9 = arith.constant 0 : index
    %14 = vector.load %arg2[%c2, %c0_8, %c0_9] : memref<9x24x128xf32, #tpu.memory_space<vmem>>, vector<1x24x128xf32>
    %15 = vector.shape_cast %14 : vector<1x24x128xf32> to vector<24x128xf32>
    %16 = arith.mulf %13, %15 : vector<24x128xf32>
    %17 = arith.addf %12, %16 : vector<24x128xf32>
    %c1_i32_10 = arith.constant 1 : i32
    %18 = tpu.dynamic_rotate %1 by %c1_i32_10 dim 1 : vector<24x128xf32>, i32 -> vector<24x128xf32>
    %c3 = arith.constant 3 : index
    %c0_11 = arith.constant 0 : index
    %c0_12 = arith.constant 0 : index
    %19 = vector.load %arg2[%c3, %c0_11, %c0_12] : memref<9x24x128xf32, #tpu.memory_space<vmem>>, vector<1x24x128xf32>
    %20 = vector.shape_cast %19 : vector<1x24x128xf32> to vector<24x128xf32>
    %21 = arith.mulf %18, %20 : vector<24x128xf32>
    %22 = arith.addf %17, %21 : vector<24x128xf32>
    %c4 = arith.constant 4 : index
    %c0_13 = arith.constant 0 : index
    %c0_14 = arith.constant 0 : index
    %23 = vector.load %arg2[%c4, %c0_13, %c0_14] : memref<9x24x128xf32, #tpu.memory_space<vmem>>, vector<1x24x128xf32>
    %24 = vector.shape_cast %23 : vector<1x24x128xf32> to vector<24x128xf32>
    %25 = arith.mulf %1, %24 : vector<24x128xf32>
    %26 = arith.addf %22, %25 : vector<24x128xf32>
    %c127_i32_15 = arith.constant 127 : i32
    %27 = tpu.dynamic_rotate %1 by %c127_i32_15 dim 1 : vector<24x128xf32>, i32 -> vector<24x128xf32>
    %c5 = arith.constant 5 : index
    %c0_16 = arith.constant 0 : index
    %c0_17 = arith.constant 0 : index
    %28 = vector.load %arg2[%c5, %c0_16, %c0_17] : memref<9x24x128xf32, #tpu.memory_space<vmem>>, vector<1x24x128xf32>
    %29 = vector.shape_cast %28 : vector<1x24x128xf32> to vector<24x128xf32>
    %30 = arith.mulf %27, %29 : vector<24x128xf32>
    %31 = arith.addf %26, %30 : vector<24x128xf32>
    %c23_i32 = arith.constant 23 : i32
    %32 = tpu.dynamic_rotate %1 by %c23_i32 dim 0 : vector<24x128xf32>, i32 -> vector<24x128xf32>
    %c1_i32_18 = arith.constant 1 : i32
    %33 = tpu.dynamic_rotate %32 by %c1_i32_18 dim 1 : vector<24x128xf32>, i32 -> vector<24x128xf32>
    %c6 = arith.constant 6 : index
    %c0_19 = arith.constant 0 : index
    %c0_20 = arith.constant 0 : index
    %34 = vector.load %arg2[%c6, %c0_19, %c0_20] : memref<9x24x128xf32, #tpu.memory_space<vmem>>, vector<1x24x128xf32>
    %35 = vector.shape_cast %34 : vector<1x24x128xf32> to vector<24x128xf32>
    %36 = arith.mulf %33, %35 : vector<24x128xf32>
    %37 = arith.addf %31, %36 : vector<24x128xf32>
    %c7 = arith.constant 7 : index
    %c0_21 = arith.constant 0 : index
    %c0_22 = arith.constant 0 : index
    %38 = vector.load %arg2[%c7, %c0_21, %c0_22] : memref<9x24x128xf32, #tpu.memory_space<vmem>>, vector<1x24x128xf32>
    %39 = vector.shape_cast %38 : vector<1x24x128xf32> to vector<24x128xf32>
    %40 = arith.mulf %32, %39 : vector<24x128xf32>
    %41 = arith.addf %37, %40 : vector<24x128xf32>
    %c127_i32_23 = arith.constant 127 : i32
    %42 = tpu.dynamic_rotate %32 by %c127_i32_23 dim 1 : vector<24x128xf32>, i32 -> vector<24x128xf32>
    %c8 = arith.constant 8 : index
    %c0_24 = arith.constant 0 : index
    %c0_25 = arith.constant 0 : index
    %43 = vector.load %arg2[%c8, %c0_24, %c0_25] : memref<9x24x128xf32, #tpu.memory_space<vmem>>, vector<1x24x128xf32>
    %44 = vector.shape_cast %43 : vector<1x24x128xf32> to vector<24x128xf32>
    %45 = arith.mulf %42, %44 : vector<24x128xf32>
    %46 = arith.addf %41, %45 : vector<24x128xf32>
    %cst_26 = arith.constant 0.000000e+00 : f32
    %47 = vector.broadcast %cst_26 : f32 to vector<24x128xf32>
    %c1_i32_27 = arith.constant 1 : i32
    %48 = tpu.dynamic_rotate %46 by %c1_i32_27 dim 0 : vector<24x128xf32>, i32 -> vector<24x128xf32>
    %c1_i32_28 = arith.constant 1 : i32
    %49 = tpu.dynamic_rotate %48 by %c1_i32_28 dim 1 : vector<24x128xf32>, i32 -> vector<24x128xf32>
    %c0_29 = arith.constant 0 : index
    %c0_30 = arith.constant 0 : index
    %c0_31 = arith.constant 0 : index
    %50 = vector.load %arg2[%c0_29, %c0_30, %c0_31] : memref<9x24x128xf32, #tpu.memory_space<vmem>>, vector<1x24x128xf32>
    %51 = vector.shape_cast %50 : vector<1x24x128xf32> to vector<24x128xf32>
    %52 = arith.mulf %49, %51 : vector<24x128xf32>
    %53 = arith.addf %47, %52 : vector<24x128xf32>
    %c1_32 = arith.constant 1 : index
    %c0_33 = arith.constant 0 : index
    %c0_34 = arith.constant 0 : index
    %54 = vector.load %arg2[%c1_32, %c0_33, %c0_34] : memref<9x24x128xf32, #tpu.memory_space<vmem>>, vector<1x24x128xf32>
    %55 = vector.shape_cast %54 : vector<1x24x128xf32> to vector<24x128xf32>
    %56 = arith.mulf %48, %55 : vector<24x128xf32>
    %57 = arith.addf %53, %56 : vector<24x128xf32>
    %c127_i32_35 = arith.constant 127 : i32
    %58 = tpu.dynamic_rotate %48 by %c127_i32_35 dim 1 : vector<24x128xf32>, i32 -> vector<24x128xf32>
    %c2_36 = arith.constant 2 : index
    %c0_37 = arith.constant 0 : index
    %c0_38 = arith.constant 0 : index
    %59 = vector.load %arg2[%c2_36, %c0_37, %c0_38] : memref<9x24x128xf32, #tpu.memory_space<vmem>>, vector<1x24x128xf32>
    %60 = vector.shape_cast %59 : vector<1x24x128xf32> to vector<24x128xf32>
    %61 = arith.mulf %58, %60 : vector<24x128xf32>
    %62 = arith.addf %57, %61 : vector<24x128xf32>
    %c1_i32_39 = arith.constant 1 : i32
    %63 = tpu.dynamic_rotate %46 by %c1_i32_39 dim 1 : vector<24x128xf32>, i32 -> vector<24x128xf32>
    %c3_40 = arith.constant 3 : index
    %c0_41 = arith.constant 0 : index
    %c0_42 = arith.constant 0 : index
    %64 = vector.load %arg2[%c3_40, %c0_41, %c0_42] : memref<9x24x128xf32, #tpu.memory_space<vmem>>, vector<1x24x128xf32>
    %65 = vector.shape_cast %64 : vector<1x24x128xf32> to vector<24x128xf32>
    %66 = arith.mulf %63, %65 : vector<24x128xf32>
    %67 = arith.addf %62, %66 : vector<24x128xf32>
    %c4_43 = arith.constant 4 : index
    %c0_44 = arith.constant 0 : index
    %c0_45 = arith.constant 0 : index
    %68 = vector.load %arg2[%c4_43, %c0_44, %c0_45] : memref<9x24x128xf32, #tpu.memory_space<vmem>>, vector<1x24x128xf32>
    %69 = vector.shape_cast %68 : vector<1x24x128xf32> to vector<24x128xf32>
    %70 = arith.mulf %46, %69 : vector<24x128xf32>
    %71 = arith.addf %67, %70 : vector<24x128xf32>
    %c127_i32_46 = arith.constant 127 : i32
    %72 = tpu.dynamic_rotate %46 by %c127_i32_46 dim 1 : vector<24x128xf32>, i32 -> vector<24x128xf32>
    %c5_47 = arith.constant 5 : index
    %c0_48 = arith.constant 0 : index
    %c0_49 = arith.constant 0 : index
    %73 = vector.load %arg2[%c5_47, %c0_48, %c0_49] : memref<9x24x128xf32, #tpu.memory_space<vmem>>, vector<1x24x128xf32>
    %74 = vector.shape_cast %73 : vector<1x24x128xf32> to vector<24x128xf32>
    %75 = arith.mulf %72, %74 : vector<24x128xf32>
    %76 = arith.addf %71, %75 : vector<24x128xf32>
    %c23_i32_50 = arith.constant 23 : i32
    %77 = tpu.dynamic_rotate %46 by %c23_i32_50 dim 0 : vector<24x128xf32>, i32 -> vector<24x128xf32>
    %c1_i32_51 = arith.constant 1 : i32
    %78 = tpu.dynamic_rotate %77 by %c1_i32_51 dim 1 : vector<24x128xf32>, i32 -> vector<24x128xf32>
    %c6_52 = arith.constant 6 : index
    %c0_53 = arith.constant 0 : index
    %c0_54 = arith.constant 0 : index
    %79 = vector.load %arg2[%c6_52, %c0_53, %c0_54] : memref<9x24x128xf32, #tpu.memory_space<vmem>>, vector<1x24x128xf32>
    %80 = vector.shape_cast %79 : vector<1x24x128xf32> to vector<24x128xf32>
    %81 = arith.mulf %78, %80 : vector<24x128xf32>
    %82 = arith.addf %76, %81 : vector<24x128xf32>
    %c7_55 = arith.constant 7 : index
    %c0_56 = arith.constant 0 : index
    %c0_57 = arith.constant 0 : index
    %83 = vector.load %arg2[%c7_55, %c0_56, %c0_57] : memref<9x24x128xf32, #tpu.memory_space<vmem>>, vector<1x24x128xf32>
    %84 = vector.shape_cast %83 : vector<1x24x128xf32> to vector<24x128xf32>
    %85 = arith.mulf %77, %84 : vector<24x128xf32>
    %86 = arith.addf %82, %85 : vector<24x128xf32>
    %c127_i32_58 = arith.constant 127 : i32
    %87 = tpu.dynamic_rotate %77 by %c127_i32_58 dim 1 : vector<24x128xf32>, i32 -> vector<24x128xf32>
    %c8_59 = arith.constant 8 : index
    %c0_60 = arith.constant 0 : index
    %c0_61 = arith.constant 0 : index
    %88 = vector.load %arg2[%c8_59, %c0_60, %c0_61] : memref<9x24x128xf32, #tpu.memory_space<vmem>>, vector<1x24x128xf32>
    %89 = vector.shape_cast %88 : vector<1x24x128xf32> to vector<24x128xf32>
    %90 = arith.mulf %87, %89 : vector<24x128xf32>
    %91 = arith.addf %86, %90 : vector<24x128xf32>
    %cst_62 = arith.constant 0.000000e+00 : f32
    %92 = vector.broadcast %cst_62 : f32 to vector<24x128xf32>
    %c1_i32_63 = arith.constant 1 : i32
    %93 = tpu.dynamic_rotate %91 by %c1_i32_63 dim 0 : vector<24x128xf32>, i32 -> vector<24x128xf32>
    %c1_i32_64 = arith.constant 1 : i32
    %94 = tpu.dynamic_rotate %93 by %c1_i32_64 dim 1 : vector<24x128xf32>, i32 -> vector<24x128xf32>
    %c0_65 = arith.constant 0 : index
    %c0_66 = arith.constant 0 : index
    %c0_67 = arith.constant 0 : index
    %95 = vector.load %arg2[%c0_65, %c0_66, %c0_67] : memref<9x24x128xf32, #tpu.memory_space<vmem>>, vector<1x24x128xf32>
    %96 = vector.shape_cast %95 : vector<1x24x128xf32> to vector<24x128xf32>
    %97 = arith.mulf %94, %96 : vector<24x128xf32>
    %98 = arith.addf %92, %97 : vector<24x128xf32>
    %c1_68 = arith.constant 1 : index
    %c0_69 = arith.constant 0 : index
    %c0_70 = arith.constant 0 : index
    %99 = vector.load %arg2[%c1_68, %c0_69, %c0_70] : memref<9x24x128xf32, #tpu.memory_space<vmem>>, vector<1x24x128xf32>
    %100 = vector.shape_cast %99 : vector<1x24x128xf32> to vector<24x128xf32>
    %101 = arith.mulf %93, %100 : vector<24x128xf32>
    %102 = arith.addf %98, %101 : vector<24x128xf32>
    %c127_i32_71 = arith.constant 127 : i32
    %103 = tpu.dynamic_rotate %93 by %c127_i32_71 dim 1 : vector<24x128xf32>, i32 -> vector<24x128xf32>
    %c2_72 = arith.constant 2 : index
    %c0_73 = arith.constant 0 : index
    %c0_74 = arith.constant 0 : index
    %104 = vector.load %arg2[%c2_72, %c0_73, %c0_74] : memref<9x24x128xf32, #tpu.memory_space<vmem>>, vector<1x24x128xf32>
    %105 = vector.shape_cast %104 : vector<1x24x128xf32> to vector<24x128xf32>
    %106 = arith.mulf %103, %105 : vector<24x128xf32>
    %107 = arith.addf %102, %106 : vector<24x128xf32>
    %c1_i32_75 = arith.constant 1 : i32
    %108 = tpu.dynamic_rotate %91 by %c1_i32_75 dim 1 : vector<24x128xf32>, i32 -> vector<24x128xf32>
    %c3_76 = arith.constant 3 : index
    %c0_77 = arith.constant 0 : index
    %c0_78 = arith.constant 0 : index
    %109 = vector.load %arg2[%c3_76, %c0_77, %c0_78] : memref<9x24x128xf32, #tpu.memory_space<vmem>>, vector<1x24x128xf32>
    %110 = vector.shape_cast %109 : vector<1x24x128xf32> to vector<24x128xf32>
    %111 = arith.mulf %108, %110 : vector<24x128xf32>
    %112 = arith.addf %107, %111 : vector<24x128xf32>
    %c4_79 = arith.constant 4 : index
    %c0_80 = arith.constant 0 : index
    %c0_81 = arith.constant 0 : index
    %113 = vector.load %arg2[%c4_79, %c0_80, %c0_81] : memref<9x24x128xf32, #tpu.memory_space<vmem>>, vector<1x24x128xf32>
    %114 = vector.shape_cast %113 : vector<1x24x128xf32> to vector<24x128xf32>
    %115 = arith.mulf %91, %114 : vector<24x128xf32>
    %116 = arith.addf %112, %115 : vector<24x128xf32>
    %c127_i32_82 = arith.constant 127 : i32
    %117 = tpu.dynamic_rotate %91 by %c127_i32_82 dim 1 : vector<24x128xf32>, i32 -> vector<24x128xf32>
    %c5_83 = arith.constant 5 : index
    %c0_84 = arith.constant 0 : index
    %c0_85 = arith.constant 0 : index
    %118 = vector.load %arg2[%c5_83, %c0_84, %c0_85] : memref<9x24x128xf32, #tpu.memory_space<vmem>>, vector<1x24x128xf32>
    %119 = vector.shape_cast %118 : vector<1x24x128xf32> to vector<24x128xf32>
    %120 = arith.mulf %117, %119 : vector<24x128xf32>
    %121 = arith.addf %116, %120 : vector<24x128xf32>
    %c23_i32_86 = arith.constant 23 : i32
    %122 = tpu.dynamic_rotate %91 by %c23_i32_86 dim 0 : vector<24x128xf32>, i32 -> vector<24x128xf32>
    %c1_i32_87 = arith.constant 1 : i32
    %123 = tpu.dynamic_rotate %122 by %c1_i32_87 dim 1 : vector<24x128xf32>, i32 -> vector<24x128xf32>
    %c6_88 = arith.constant 6 : index
    %c0_89 = arith.constant 0 : index
    %c0_90 = arith.constant 0 : index
    %124 = vector.load %arg2[%c6_88, %c0_89, %c0_90] : memref<9x24x128xf32, #tpu.memory_space<vmem>>, vector<1x24x128xf32>
    %125 = vector.shape_cast %124 : vector<1x24x128xf32> to vector<24x128xf32>
    %126 = arith.mulf %123, %125 : vector<24x128xf32>
    %127 = arith.addf %121, %126 : vector<24x128xf32>
    %c7_91 = arith.constant 7 : index
    %c0_92 = arith.constant 0 : index
    %c0_93 = arith.constant 0 : index
    %128 = vector.load %arg2[%c7_91, %c0_92, %c0_93] : memref<9x24x128xf32, #tpu.memory_space<vmem>>, vector<1x24x128xf32>
    %129 = vector.shape_cast %128 : vector<1x24x128xf32> to vector<24x128xf32>
    %130 = arith.mulf %122, %129 : vector<24x128xf32>
    %131 = arith.addf %127, %130 : vector<24x128xf32>
    %c127_i32_94 = arith.constant 127 : i32
    %132 = tpu.dynamic_rotate %122 by %c127_i32_94 dim 1 : vector<24x128xf32>, i32 -> vector<24x128xf32>
    %c8_95 = arith.constant 8 : index
    %c0_96 = arith.constant 0 : index
    %c0_97 = arith.constant 0 : index
    %133 = vector.load %arg2[%c8_95, %c0_96, %c0_97] : memref<9x24x128xf32, #tpu.memory_space<vmem>>, vector<1x24x128xf32>
    %134 = vector.shape_cast %133 : vector<1x24x128xf32> to vector<24x128xf32>
    %135 = arith.mulf %132, %134 : vector<24x128xf32>
    %136 = arith.addf %131, %135 : vector<24x128xf32>
    %cst_98 = arith.constant 0.000000e+00 : f32
    %137 = vector.broadcast %cst_98 : f32 to vector<24x128xf32>
    %c1_i32_99 = arith.constant 1 : i32
    %138 = tpu.dynamic_rotate %136 by %c1_i32_99 dim 0 : vector<24x128xf32>, i32 -> vector<24x128xf32>
    %c1_i32_100 = arith.constant 1 : i32
    %139 = tpu.dynamic_rotate %138 by %c1_i32_100 dim 1 : vector<24x128xf32>, i32 -> vector<24x128xf32>
    %c0_101 = arith.constant 0 : index
    %c0_102 = arith.constant 0 : index
    %c0_103 = arith.constant 0 : index
    %140 = vector.load %arg2[%c0_101, %c0_102, %c0_103] : memref<9x24x128xf32, #tpu.memory_space<vmem>>, vector<1x24x128xf32>
    %141 = vector.shape_cast %140 : vector<1x24x128xf32> to vector<24x128xf32>
    %142 = arith.mulf %139, %141 : vector<24x128xf32>
    %143 = arith.addf %137, %142 : vector<24x128xf32>
    %c1_104 = arith.constant 1 : index
    %c0_105 = arith.constant 0 : index
    %c0_106 = arith.constant 0 : index
    %144 = vector.load %arg2[%c1_104, %c0_105, %c0_106] : memref<9x24x128xf32, #tpu.memory_space<vmem>>, vector<1x24x128xf32>
    %145 = vector.shape_cast %144 : vector<1x24x128xf32> to vector<24x128xf32>
    %146 = arith.mulf %138, %145 : vector<24x128xf32>
    %147 = arith.addf %143, %146 : vector<24x128xf32>
    %c127_i32_107 = arith.constant 127 : i32
    %148 = tpu.dynamic_rotate %138 by %c127_i32_107 dim 1 : vector<24x128xf32>, i32 -> vector<24x128xf32>
    %c2_108 = arith.constant 2 : index
    %c0_109 = arith.constant 0 : index
    %c0_110 = arith.constant 0 : index
    %149 = vector.load %arg2[%c2_108, %c0_109, %c0_110] : memref<9x24x128xf32, #tpu.memory_space<vmem>>, vector<1x24x128xf32>
    %150 = vector.shape_cast %149 : vector<1x24x128xf32> to vector<24x128xf32>
    %151 = arith.mulf %148, %150 : vector<24x128xf32>
    %152 = arith.addf %147, %151 : vector<24x128xf32>
    %c1_i32_111 = arith.constant 1 : i32
    %153 = tpu.dynamic_rotate %136 by %c1_i32_111 dim 1 : vector<24x128xf32>, i32 -> vector<24x128xf32>
    %c3_112 = arith.constant 3 : index
    %c0_113 = arith.constant 0 : index
    %c0_114 = arith.constant 0 : index
    %154 = vector.load %arg2[%c3_112, %c0_113, %c0_114] : memref<9x24x128xf32, #tpu.memory_space<vmem>>, vector<1x24x128xf32>
    %155 = vector.shape_cast %154 : vector<1x24x128xf32> to vector<24x128xf32>
    %156 = arith.mulf %153, %155 : vector<24x128xf32>
    %157 = arith.addf %152, %156 : vector<24x128xf32>
    %c4_115 = arith.constant 4 : index
    %c0_116 = arith.constant 0 : index
    %c0_117 = arith.constant 0 : index
    %158 = vector.load %arg2[%c4_115, %c0_116, %c0_117] : memref<9x24x128xf32, #tpu.memory_space<vmem>>, vector<1x24x128xf32>
    %159 = vector.shape_cast %158 : vector<1x24x128xf32> to vector<24x128xf32>
    %160 = arith.mulf %136, %159 : vector<24x128xf32>
    %161 = arith.addf %157, %160 : vector<24x128xf32>
    %c127_i32_118 = arith.constant 127 : i32
    %162 = tpu.dynamic_rotate %136 by %c127_i32_118 dim 1 : vector<24x128xf32>, i32 -> vector<24x128xf32>
    %c5_119 = arith.constant 5 : index
    %c0_120 = arith.constant 0 : index
    %c0_121 = arith.constant 0 : index
    %163 = vector.load %arg2[%c5_119, %c0_120, %c0_121] : memref<9x24x128xf32, #tpu.memory_space<vmem>>, vector<1x24x128xf32>
    %164 = vector.shape_cast %163 : vector<1x24x128xf32> to vector<24x128xf32>
    %165 = arith.mulf %162, %164 : vector<24x128xf32>
    %166 = arith.addf %161, %165 : vector<24x128xf32>
    %c23_i32_122 = arith.constant 23 : i32
    %167 = tpu.dynamic_rotate %136 by %c23_i32_122 dim 0 : vector<24x128xf32>, i32 -> vector<24x128xf32>
    %c1_i32_123 = arith.constant 1 : i32
    %168 = tpu.dynamic_rotate %167 by %c1_i32_123 dim 1 : vector<24x128xf32>, i32 -> vector<24x128xf32>
    %c6_124 = arith.constant 6 : index
    %c0_125 = arith.constant 0 : index
    %c0_126 = arith.constant 0 : index
    %169 = vector.load %arg2[%c6_124, %c0_125, %c0_126] : memref<9x24x128xf32, #tpu.memory_space<vmem>>, vector<1x24x128xf32>
    %170 = vector.shape_cast %169 : vector<1x24x128xf32> to vector<24x128xf32>
    %171 = arith.mulf %168, %170 : vector<24x128xf32>
    %172 = arith.addf %166, %171 : vector<24x128xf32>
    %c7_127 = arith.constant 7 : index
    %c0_128 = arith.constant 0 : index
    %c0_129 = arith.constant 0 : index
    %173 = vector.load %arg2[%c7_127, %c0_128, %c0_129] : memref<9x24x128xf32, #tpu.memory_space<vmem>>, vector<1x24x128xf32>
    %174 = vector.shape_cast %173 : vector<1x24x128xf32> to vector<24x128xf32>
    %175 = arith.mulf %167, %174 : vector<24x128xf32>
    %176 = arith.addf %172, %175 : vector<24x128xf32>
    %c127_i32_130 = arith.constant 127 : i32
    %177 = tpu.dynamic_rotate %167 by %c127_i32_130 dim 1 : vector<24x128xf32>, i32 -> vector<24x128xf32>
    %c8_131 = arith.constant 8 : index
    %c0_132 = arith.constant 0 : index
    %c0_133 = arith.constant 0 : index
    %178 = vector.load %arg2[%c8_131, %c0_132, %c0_133] : memref<9x24x128xf32, #tpu.memory_space<vmem>>, vector<1x24x128xf32>
    %179 = vector.shape_cast %178 : vector<1x24x128xf32> to vector<24x128xf32>
    %180 = arith.mulf %177, %179 : vector<24x128xf32>
    %181 = arith.addf %176, %180 : vector<24x128xf32>
    %cst_134 = arith.constant 0.000000e+00 : f32
    %182 = vector.broadcast %cst_134 : f32 to vector<24x128xf32>
    %c1_i32_135 = arith.constant 1 : i32
    %183 = tpu.dynamic_rotate %181 by %c1_i32_135 dim 0 : vector<24x128xf32>, i32 -> vector<24x128xf32>
    %c1_i32_136 = arith.constant 1 : i32
    %184 = tpu.dynamic_rotate %183 by %c1_i32_136 dim 1 : vector<24x128xf32>, i32 -> vector<24x128xf32>
    %c0_137 = arith.constant 0 : index
    %c0_138 = arith.constant 0 : index
    %c0_139 = arith.constant 0 : index
    %185 = vector.load %arg2[%c0_137, %c0_138, %c0_139] : memref<9x24x128xf32, #tpu.memory_space<vmem>>, vector<1x24x128xf32>
    %186 = vector.shape_cast %185 : vector<1x24x128xf32> to vector<24x128xf32>
    %187 = arith.mulf %184, %186 : vector<24x128xf32>
    %188 = arith.addf %182, %187 : vector<24x128xf32>
    %c1_140 = arith.constant 1 : index
    %c0_141 = arith.constant 0 : index
    %c0_142 = arith.constant 0 : index
    %189 = vector.load %arg2[%c1_140, %c0_141, %c0_142] : memref<9x24x128xf32, #tpu.memory_space<vmem>>, vector<1x24x128xf32>
    %190 = vector.shape_cast %189 : vector<1x24x128xf32> to vector<24x128xf32>
    %191 = arith.mulf %183, %190 : vector<24x128xf32>
    %192 = arith.addf %188, %191 : vector<24x128xf32>
    %c127_i32_143 = arith.constant 127 : i32
    %193 = tpu.dynamic_rotate %183 by %c127_i32_143 dim 1 : vector<24x128xf32>, i32 -> vector<24x128xf32>
    %c2_144 = arith.constant 2 : index
    %c0_145 = arith.constant 0 : index
    %c0_146 = arith.constant 0 : index
    %194 = vector.load %arg2[%c2_144, %c0_145, %c0_146] : memref<9x24x128xf32, #tpu.memory_space<vmem>>, vector<1x24x128xf32>
    %195 = vector.shape_cast %194 : vector<1x24x128xf32> to vector<24x128xf32>
    %196 = arith.mulf %193, %195 : vector<24x128xf32>
    %197 = arith.addf %192, %196 : vector<24x128xf32>
    %c1_i32_147 = arith.constant 1 : i32
    %198 = tpu.dynamic_rotate %181 by %c1_i32_147 dim 1 : vector<24x128xf32>, i32 -> vector<24x128xf32>
    %c3_148 = arith.constant 3 : index
    %c0_149 = arith.constant 0 : index
    %c0_150 = arith.constant 0 : index
    %199 = vector.load %arg2[%c3_148, %c0_149, %c0_150] : memref<9x24x128xf32, #tpu.memory_space<vmem>>, vector<1x24x128xf32>
    %200 = vector.shape_cast %199 : vector<1x24x128xf32> to vector<24x128xf32>
    %201 = arith.mulf %198, %200 : vector<24x128xf32>
    %202 = arith.addf %197, %201 : vector<24x128xf32>
    %c4_151 = arith.constant 4 : index
    %c0_152 = arith.constant 0 : index
    %c0_153 = arith.constant 0 : index
    %203 = vector.load %arg2[%c4_151, %c0_152, %c0_153] : memref<9x24x128xf32, #tpu.memory_space<vmem>>, vector<1x24x128xf32>
    %204 = vector.shape_cast %203 : vector<1x24x128xf32> to vector<24x128xf32>
    %205 = arith.mulf %181, %204 : vector<24x128xf32>
    %206 = arith.addf %202, %205 : vector<24x128xf32>
    %c127_i32_154 = arith.constant 127 : i32
    %207 = tpu.dynamic_rotate %181 by %c127_i32_154 dim 1 : vector<24x128xf32>, i32 -> vector<24x128xf32>
    %c5_155 = arith.constant 5 : index
    %c0_156 = arith.constant 0 : index
    %c0_157 = arith.constant 0 : index
    %208 = vector.load %arg2[%c5_155, %c0_156, %c0_157] : memref<9x24x128xf32, #tpu.memory_space<vmem>>, vector<1x24x128xf32>
    %209 = vector.shape_cast %208 : vector<1x24x128xf32> to vector<24x128xf32>
    %210 = arith.mulf %207, %209 : vector<24x128xf32>
    %211 = arith.addf %206, %210 : vector<24x128xf32>
    %c23_i32_158 = arith.constant 23 : i32
    %212 = tpu.dynamic_rotate %181 by %c23_i32_158 dim 0 : vector<24x128xf32>, i32 -> vector<24x128xf32>
    %c1_i32_159 = arith.constant 1 : i32
    %213 = tpu.dynamic_rotate %212 by %c1_i32_159 dim 1 : vector<24x128xf32>, i32 -> vector<24x128xf32>
    %c6_160 = arith.constant 6 : index
    %c0_161 = arith.constant 0 : index
    %c0_162 = arith.constant 0 : index
    %214 = vector.load %arg2[%c6_160, %c0_161, %c0_162] : memref<9x24x128xf32, #tpu.memory_space<vmem>>, vector<1x24x128xf32>
    %215 = vector.shape_cast %214 : vector<1x24x128xf32> to vector<24x128xf32>
    %216 = arith.mulf %213, %215 : vector<24x128xf32>
    %217 = arith.addf %211, %216 : vector<24x128xf32>
    %c7_163 = arith.constant 7 : index
    %c0_164 = arith.constant 0 : index
    %c0_165 = arith.constant 0 : index
    %218 = vector.load %arg2[%c7_163, %c0_164, %c0_165] : memref<9x24x128xf32, #tpu.memory_space<vmem>>, vector<1x24x128xf32>
    %219 = vector.shape_cast %218 : vector<1x24x128xf32> to vector<24x128xf32>
    %220 = arith.mulf %212, %219 : vector<24x128xf32>
    %221 = arith.addf %217, %220 : vector<24x128xf32>
    %c127_i32_166 = arith.constant 127 : i32
    %222 = tpu.dynamic_rotate %212 by %c127_i32_166 dim 1 : vector<24x128xf32>, i32 -> vector<24x128xf32>
    %c8_167 = arith.constant 8 : index
    %c0_168 = arith.constant 0 : index
    %c0_169 = arith.constant 0 : index
    %223 = vector.load %arg2[%c8_167, %c0_168, %c0_169] : memref<9x24x128xf32, #tpu.memory_space<vmem>>, vector<1x24x128xf32>
    %224 = vector.shape_cast %223 : vector<1x24x128xf32> to vector<24x128xf32>
    %225 = arith.mulf %222, %224 : vector<24x128xf32>
    %226 = arith.addf %221, %225 : vector<24x128xf32>
    %cst_170 = arith.constant 0.000000e+00 : f32
    %227 = vector.broadcast %cst_170 : f32 to vector<24x128xf32>
    %c1_i32_171 = arith.constant 1 : i32
    %228 = tpu.dynamic_rotate %226 by %c1_i32_171 dim 0 : vector<24x128xf32>, i32 -> vector<24x128xf32>
    %c1_i32_172 = arith.constant 1 : i32
    %229 = tpu.dynamic_rotate %228 by %c1_i32_172 dim 1 : vector<24x128xf32>, i32 -> vector<24x128xf32>
    %c0_173 = arith.constant 0 : index
    %c0_174 = arith.constant 0 : index
    %c0_175 = arith.constant 0 : index
    %230 = vector.load %arg2[%c0_173, %c0_174, %c0_175] : memref<9x24x128xf32, #tpu.memory_space<vmem>>, vector<1x24x128xf32>
    %231 = vector.shape_cast %230 : vector<1x24x128xf32> to vector<24x128xf32>
    %232 = arith.mulf %229, %231 : vector<24x128xf32>
    %233 = arith.addf %227, %232 : vector<24x128xf32>
    %c1_176 = arith.constant 1 : index
    %c0_177 = arith.constant 0 : index
    %c0_178 = arith.constant 0 : index
    %234 = vector.load %arg2[%c1_176, %c0_177, %c0_178] : memref<9x24x128xf32, #tpu.memory_space<vmem>>, vector<1x24x128xf32>
    %235 = vector.shape_cast %234 : vector<1x24x128xf32> to vector<24x128xf32>
    %236 = arith.mulf %228, %235 : vector<24x128xf32>
    %237 = arith.addf %233, %236 : vector<24x128xf32>
    %c127_i32_179 = arith.constant 127 : i32
    %238 = tpu.dynamic_rotate %228 by %c127_i32_179 dim 1 : vector<24x128xf32>, i32 -> vector<24x128xf32>
    %c2_180 = arith.constant 2 : index
    %c0_181 = arith.constant 0 : index
    %c0_182 = arith.constant 0 : index
    %239 = vector.load %arg2[%c2_180, %c0_181, %c0_182] : memref<9x24x128xf32, #tpu.memory_space<vmem>>, vector<1x24x128xf32>
    %240 = vector.shape_cast %239 : vector<1x24x128xf32> to vector<24x128xf32>
    %241 = arith.mulf %238, %240 : vector<24x128xf32>
    %242 = arith.addf %237, %241 : vector<24x128xf32>
    %c1_i32_183 = arith.constant 1 : i32
    %243 = tpu.dynamic_rotate %226 by %c1_i32_183 dim 1 : vector<24x128xf32>, i32 -> vector<24x128xf32>
    %c3_184 = arith.constant 3 : index
    %c0_185 = arith.constant 0 : index
    %c0_186 = arith.constant 0 : index
    %244 = vector.load %arg2[%c3_184, %c0_185, %c0_186] : memref<9x24x128xf32, #tpu.memory_space<vmem>>, vector<1x24x128xf32>
    %245 = vector.shape_cast %244 : vector<1x24x128xf32> to vector<24x128xf32>
    %246 = arith.mulf %243, %245 : vector<24x128xf32>
    %247 = arith.addf %242, %246 : vector<24x128xf32>
    %c4_187 = arith.constant 4 : index
    %c0_188 = arith.constant 0 : index
    %c0_189 = arith.constant 0 : index
    %248 = vector.load %arg2[%c4_187, %c0_188, %c0_189] : memref<9x24x128xf32, #tpu.memory_space<vmem>>, vector<1x24x128xf32>
    %249 = vector.shape_cast %248 : vector<1x24x128xf32> to vector<24x128xf32>
    %250 = arith.mulf %226, %249 : vector<24x128xf32>
    %251 = arith.addf %247, %250 : vector<24x128xf32>
    %c127_i32_190 = arith.constant 127 : i32
    %252 = tpu.dynamic_rotate %226 by %c127_i32_190 dim 1 : vector<24x128xf32>, i32 -> vector<24x128xf32>
    %c5_191 = arith.constant 5 : index
    %c0_192 = arith.constant 0 : index
    %c0_193 = arith.constant 0 : index
    %253 = vector.load %arg2[%c5_191, %c0_192, %c0_193] : memref<9x24x128xf32, #tpu.memory_space<vmem>>, vector<1x24x128xf32>
    %254 = vector.shape_cast %253 : vector<1x24x128xf32> to vector<24x128xf32>
    %255 = arith.mulf %252, %254 : vector<24x128xf32>
    %256 = arith.addf %251, %255 : vector<24x128xf32>
    %c23_i32_194 = arith.constant 23 : i32
    %257 = tpu.dynamic_rotate %226 by %c23_i32_194 dim 0 : vector<24x128xf32>, i32 -> vector<24x128xf32>
    %c1_i32_195 = arith.constant 1 : i32
    %258 = tpu.dynamic_rotate %257 by %c1_i32_195 dim 1 : vector<24x128xf32>, i32 -> vector<24x128xf32>
    %c6_196 = arith.constant 6 : index
    %c0_197 = arith.constant 0 : index
    %c0_198 = arith.constant 0 : index
    %259 = vector.load %arg2[%c6_196, %c0_197, %c0_198] : memref<9x24x128xf32, #tpu.memory_space<vmem>>, vector<1x24x128xf32>
    %260 = vector.shape_cast %259 : vector<1x24x128xf32> to vector<24x128xf32>
    %261 = arith.mulf %258, %260 : vector<24x128xf32>
    %262 = arith.addf %256, %261 : vector<24x128xf32>
    %c7_199 = arith.constant 7 : index
    %c0_200 = arith.constant 0 : index
    %c0_201 = arith.constant 0 : index
    %263 = vector.load %arg2[%c7_199, %c0_200, %c0_201] : memref<9x24x128xf32, #tpu.memory_space<vmem>>, vector<1x24x128xf32>
    %264 = vector.shape_cast %263 : vector<1x24x128xf32> to vector<24x128xf32>
    %265 = arith.mulf %257, %264 : vector<24x128xf32>
    %266 = arith.addf %262, %265 : vector<24x128xf32>
    %c127_i32_202 = arith.constant 127 : i32
    %267 = tpu.dynamic_rotate %257 by %c127_i32_202 dim 1 : vector<24x128xf32>, i32 -> vector<24x128xf32>
    %c8_203 = arith.constant 8 : index
    %c0_204 = arith.constant 0 : index
    %c0_205 = arith.constant 0 : index
    %268 = vector.load %arg2[%c8_203, %c0_204, %c0_205] : memref<9x24x128xf32, #tpu.memory_space<vmem>>, vector<1x24x128xf32>
    %269 = vector.shape_cast %268 : vector<1x24x128xf32> to vector<24x128xf32>
    %270 = arith.mulf %267, %269 : vector<24x128xf32>
    %271 = arith.addf %266, %270 : vector<24x128xf32>
    %cst_206 = arith.constant 0.000000e+00 : f32
    %272 = vector.broadcast %cst_206 : f32 to vector<24x128xf32>
    %c1_i32_207 = arith.constant 1 : i32
    %273 = tpu.dynamic_rotate %271 by %c1_i32_207 dim 0 : vector<24x128xf32>, i32 -> vector<24x128xf32>
    %c1_i32_208 = arith.constant 1 : i32
    %274 = tpu.dynamic_rotate %273 by %c1_i32_208 dim 1 : vector<24x128xf32>, i32 -> vector<24x128xf32>
    %c0_209 = arith.constant 0 : index
    %c0_210 = arith.constant 0 : index
    %c0_211 = arith.constant 0 : index
    %275 = vector.load %arg2[%c0_209, %c0_210, %c0_211] : memref<9x24x128xf32, #tpu.memory_space<vmem>>, vector<1x24x128xf32>
    %276 = vector.shape_cast %275 : vector<1x24x128xf32> to vector<24x128xf32>
    %277 = arith.mulf %274, %276 : vector<24x128xf32>
    %278 = arith.addf %272, %277 : vector<24x128xf32>
    %c1_212 = arith.constant 1 : index
    %c0_213 = arith.constant 0 : index
    %c0_214 = arith.constant 0 : index
    %279 = vector.load %arg2[%c1_212, %c0_213, %c0_214] : memref<9x24x128xf32, #tpu.memory_space<vmem>>, vector<1x24x128xf32>
    %280 = vector.shape_cast %279 : vector<1x24x128xf32> to vector<24x128xf32>
    %281 = arith.mulf %273, %280 : vector<24x128xf32>
    %282 = arith.addf %278, %281 : vector<24x128xf32>
    %c127_i32_215 = arith.constant 127 : i32
    %283 = tpu.dynamic_rotate %273 by %c127_i32_215 dim 1 : vector<24x128xf32>, i32 -> vector<24x128xf32>
    %c2_216 = arith.constant 2 : index
    %c0_217 = arith.constant 0 : index
    %c0_218 = arith.constant 0 : index
    %284 = vector.load %arg2[%c2_216, %c0_217, %c0_218] : memref<9x24x128xf32, #tpu.memory_space<vmem>>, vector<1x24x128xf32>
    %285 = vector.shape_cast %284 : vector<1x24x128xf32> to vector<24x128xf32>
    %286 = arith.mulf %283, %285 : vector<24x128xf32>
    %287 = arith.addf %282, %286 : vector<24x128xf32>
    %c1_i32_219 = arith.constant 1 : i32
    %288 = tpu.dynamic_rotate %271 by %c1_i32_219 dim 1 : vector<24x128xf32>, i32 -> vector<24x128xf32>
    %c3_220 = arith.constant 3 : index
    %c0_221 = arith.constant 0 : index
    %c0_222 = arith.constant 0 : index
    %289 = vector.load %arg2[%c3_220, %c0_221, %c0_222] : memref<9x24x128xf32, #tpu.memory_space<vmem>>, vector<1x24x128xf32>
    %290 = vector.shape_cast %289 : vector<1x24x128xf32> to vector<24x128xf32>
    %291 = arith.mulf %288, %290 : vector<24x128xf32>
    %292 = arith.addf %287, %291 : vector<24x128xf32>
    %c4_223 = arith.constant 4 : index
    %c0_224 = arith.constant 0 : index
    %c0_225 = arith.constant 0 : index
    %293 = vector.load %arg2[%c4_223, %c0_224, %c0_225] : memref<9x24x128xf32, #tpu.memory_space<vmem>>, vector<1x24x128xf32>
    %294 = vector.shape_cast %293 : vector<1x24x128xf32> to vector<24x128xf32>
    %295 = arith.mulf %271, %294 : vector<24x128xf32>
    %296 = arith.addf %292, %295 : vector<24x128xf32>
    %c127_i32_226 = arith.constant 127 : i32
    %297 = tpu.dynamic_rotate %271 by %c127_i32_226 dim 1 : vector<24x128xf32>, i32 -> vector<24x128xf32>
    %c5_227 = arith.constant 5 : index
    %c0_228 = arith.constant 0 : index
    %c0_229 = arith.constant 0 : index
    %298 = vector.load %arg2[%c5_227, %c0_228, %c0_229] : memref<9x24x128xf32, #tpu.memory_space<vmem>>, vector<1x24x128xf32>
    %299 = vector.shape_cast %298 : vector<1x24x128xf32> to vector<24x128xf32>
    %300 = arith.mulf %297, %299 : vector<24x128xf32>
    %301 = arith.addf %296, %300 : vector<24x128xf32>
    %c23_i32_230 = arith.constant 23 : i32
    %302 = tpu.dynamic_rotate %271 by %c23_i32_230 dim 0 : vector<24x128xf32>, i32 -> vector<24x128xf32>
    %c1_i32_231 = arith.constant 1 : i32
    %303 = tpu.dynamic_rotate %302 by %c1_i32_231 dim 1 : vector<24x128xf32>, i32 -> vector<24x128xf32>
    %c6_232 = arith.constant 6 : index
    %c0_233 = arith.constant 0 : index
    %c0_234 = arith.constant 0 : index
    %304 = vector.load %arg2[%c6_232, %c0_233, %c0_234] : memref<9x24x128xf32, #tpu.memory_space<vmem>>, vector<1x24x128xf32>
    %305 = vector.shape_cast %304 : vector<1x24x128xf32> to vector<24x128xf32>
    %306 = arith.mulf %303, %305 : vector<24x128xf32>
    %307 = arith.addf %301, %306 : vector<24x128xf32>
    %c7_235 = arith.constant 7 : index
    %c0_236 = arith.constant 0 : index
    %c0_237 = arith.constant 0 : index
    %308 = vector.load %arg2[%c7_235, %c0_236, %c0_237] : memref<9x24x128xf32, #tpu.memory_space<vmem>>, vector<1x24x128xf32>
    %309 = vector.shape_cast %308 : vector<1x24x128xf32> to vector<24x128xf32>
    %310 = arith.mulf %302, %309 : vector<24x128xf32>
    %311 = arith.addf %307, %310 : vector<24x128xf32>
    %c127_i32_238 = arith.constant 127 : i32
    %312 = tpu.dynamic_rotate %302 by %c127_i32_238 dim 1 : vector<24x128xf32>, i32 -> vector<24x128xf32>
    %c8_239 = arith.constant 8 : index
    %c0_240 = arith.constant 0 : index
    %c0_241 = arith.constant 0 : index
    %313 = vector.load %arg2[%c8_239, %c0_240, %c0_241] : memref<9x24x128xf32, #tpu.memory_space<vmem>>, vector<1x24x128xf32>
    %314 = vector.shape_cast %313 : vector<1x24x128xf32> to vector<24x128xf32>
    %315 = arith.mulf %312, %314 : vector<24x128xf32>
    %316 = arith.addf %311, %315 : vector<24x128xf32>
    %cst_242 = arith.constant 0.000000e+00 : f32
    %317 = vector.broadcast %cst_242 : f32 to vector<24x128xf32>
    %c1_i32_243 = arith.constant 1 : i32
    %318 = tpu.dynamic_rotate %316 by %c1_i32_243 dim 0 : vector<24x128xf32>, i32 -> vector<24x128xf32>
    %c1_i32_244 = arith.constant 1 : i32
    %319 = tpu.dynamic_rotate %318 by %c1_i32_244 dim 1 : vector<24x128xf32>, i32 -> vector<24x128xf32>
    %c0_245 = arith.constant 0 : index
    %c0_246 = arith.constant 0 : index
    %c0_247 = arith.constant 0 : index
    %320 = vector.load %arg2[%c0_245, %c0_246, %c0_247] : memref<9x24x128xf32, #tpu.memory_space<vmem>>, vector<1x24x128xf32>
    %321 = vector.shape_cast %320 : vector<1x24x128xf32> to vector<24x128xf32>
    %322 = arith.mulf %319, %321 : vector<24x128xf32>
    %323 = arith.addf %317, %322 : vector<24x128xf32>
    %c1_248 = arith.constant 1 : index
    %c0_249 = arith.constant 0 : index
    %c0_250 = arith.constant 0 : index
    %324 = vector.load %arg2[%c1_248, %c0_249, %c0_250] : memref<9x24x128xf32, #tpu.memory_space<vmem>>, vector<1x24x128xf32>
    %325 = vector.shape_cast %324 : vector<1x24x128xf32> to vector<24x128xf32>
    %326 = arith.mulf %318, %325 : vector<24x128xf32>
    %327 = arith.addf %323, %326 : vector<24x128xf32>
    %c127_i32_251 = arith.constant 127 : i32
    %328 = tpu.dynamic_rotate %318 by %c127_i32_251 dim 1 : vector<24x128xf32>, i32 -> vector<24x128xf32>
    %c2_252 = arith.constant 2 : index
    %c0_253 = arith.constant 0 : index
    %c0_254 = arith.constant 0 : index
    %329 = vector.load %arg2[%c2_252, %c0_253, %c0_254] : memref<9x24x128xf32, #tpu.memory_space<vmem>>, vector<1x24x128xf32>
    %330 = vector.shape_cast %329 : vector<1x24x128xf32> to vector<24x128xf32>
    %331 = arith.mulf %328, %330 : vector<24x128xf32>
    %332 = arith.addf %327, %331 : vector<24x128xf32>
    %c1_i32_255 = arith.constant 1 : i32
    %333 = tpu.dynamic_rotate %316 by %c1_i32_255 dim 1 : vector<24x128xf32>, i32 -> vector<24x128xf32>
    %c3_256 = arith.constant 3 : index
    %c0_257 = arith.constant 0 : index
    %c0_258 = arith.constant 0 : index
    %334 = vector.load %arg2[%c3_256, %c0_257, %c0_258] : memref<9x24x128xf32, #tpu.memory_space<vmem>>, vector<1x24x128xf32>
    %335 = vector.shape_cast %334 : vector<1x24x128xf32> to vector<24x128xf32>
    %336 = arith.mulf %333, %335 : vector<24x128xf32>
    %337 = arith.addf %332, %336 : vector<24x128xf32>
    %c4_259 = arith.constant 4 : index
    %c0_260 = arith.constant 0 : index
    %c0_261 = arith.constant 0 : index
    %338 = vector.load %arg2[%c4_259, %c0_260, %c0_261] : memref<9x24x128xf32, #tpu.memory_space<vmem>>, vector<1x24x128xf32>
    %339 = vector.shape_cast %338 : vector<1x24x128xf32> to vector<24x128xf32>
    %340 = arith.mulf %316, %339 : vector<24x128xf32>
    %341 = arith.addf %337, %340 : vector<24x128xf32>
    %c127_i32_262 = arith.constant 127 : i32
    %342 = tpu.dynamic_rotate %316 by %c127_i32_262 dim 1 : vector<24x128xf32>, i32 -> vector<24x128xf32>
    %c5_263 = arith.constant 5 : index
    %c0_264 = arith.constant 0 : index
    %c0_265 = arith.constant 0 : index
    %343 = vector.load %arg2[%c5_263, %c0_264, %c0_265] : memref<9x24x128xf32, #tpu.memory_space<vmem>>, vector<1x24x128xf32>
    %344 = vector.shape_cast %343 : vector<1x24x128xf32> to vector<24x128xf32>
    %345 = arith.mulf %342, %344 : vector<24x128xf32>
    %346 = arith.addf %341, %345 : vector<24x128xf32>
    %c23_i32_266 = arith.constant 23 : i32
    %347 = tpu.dynamic_rotate %316 by %c23_i32_266 dim 0 : vector<24x128xf32>, i32 -> vector<24x128xf32>
    %c1_i32_267 = arith.constant 1 : i32
    %348 = tpu.dynamic_rotate %347 by %c1_i32_267 dim 1 : vector<24x128xf32>, i32 -> vector<24x128xf32>
    %c6_268 = arith.constant 6 : index
    %c0_269 = arith.constant 0 : index
    %c0_270 = arith.constant 0 : index
    %349 = vector.load %arg2[%c6_268, %c0_269, %c0_270] : memref<9x24x128xf32, #tpu.memory_space<vmem>>, vector<1x24x128xf32>
    %350 = vector.shape_cast %349 : vector<1x24x128xf32> to vector<24x128xf32>
    %351 = arith.mulf %348, %350 : vector<24x128xf32>
    %352 = arith.addf %346, %351 : vector<24x128xf32>
    %c7_271 = arith.constant 7 : index
    %c0_272 = arith.constant 0 : index
    %c0_273 = arith.constant 0 : index
    %353 = vector.load %arg2[%c7_271, %c0_272, %c0_273] : memref<9x24x128xf32, #tpu.memory_space<vmem>>, vector<1x24x128xf32>
    %354 = vector.shape_cast %353 : vector<1x24x128xf32> to vector<24x128xf32>
    %355 = arith.mulf %347, %354 : vector<24x128xf32>
    %356 = arith.addf %352, %355 : vector<24x128xf32>
    %c127_i32_274 = arith.constant 127 : i32
    %357 = tpu.dynamic_rotate %347 by %c127_i32_274 dim 1 : vector<24x128xf32>, i32 -> vector<24x128xf32>
    %c8_275 = arith.constant 8 : index
    %c0_276 = arith.constant 0 : index
    %c0_277 = arith.constant 0 : index
    %358 = vector.load %arg2[%c8_275, %c0_276, %c0_277] : memref<9x24x128xf32, #tpu.memory_space<vmem>>, vector<1x24x128xf32>
    %359 = vector.shape_cast %358 : vector<1x24x128xf32> to vector<24x128xf32>
    %360 = arith.mulf %357, %359 : vector<24x128xf32>
    %361 = arith.addf %356, %360 : vector<24x128xf32>
    %cst_278 = arith.constant 0.000000e+00 : f32
    %362 = vector.broadcast %cst_278 : f32 to vector<24x128xf32>
    %c1_i32_279 = arith.constant 1 : i32
    %363 = tpu.dynamic_rotate %361 by %c1_i32_279 dim 0 : vector<24x128xf32>, i32 -> vector<24x128xf32>
    %c1_i32_280 = arith.constant 1 : i32
    %364 = tpu.dynamic_rotate %363 by %c1_i32_280 dim 1 : vector<24x128xf32>, i32 -> vector<24x128xf32>
    %c0_281 = arith.constant 0 : index
    %c0_282 = arith.constant 0 : index
    %c0_283 = arith.constant 0 : index
    %365 = vector.load %arg2[%c0_281, %c0_282, %c0_283] : memref<9x24x128xf32, #tpu.memory_space<vmem>>, vector<1x24x128xf32>
    %366 = vector.shape_cast %365 : vector<1x24x128xf32> to vector<24x128xf32>
    %367 = arith.mulf %364, %366 : vector<24x128xf32>
    %368 = arith.addf %362, %367 : vector<24x128xf32>
    %c1_284 = arith.constant 1 : index
    %c0_285 = arith.constant 0 : index
    %c0_286 = arith.constant 0 : index
    %369 = vector.load %arg2[%c1_284, %c0_285, %c0_286] : memref<9x24x128xf32, #tpu.memory_space<vmem>>, vector<1x24x128xf32>
    %370 = vector.shape_cast %369 : vector<1x24x128xf32> to vector<24x128xf32>
    %371 = arith.mulf %363, %370 : vector<24x128xf32>
    %372 = arith.addf %368, %371 : vector<24x128xf32>
    %c127_i32_287 = arith.constant 127 : i32
    %373 = tpu.dynamic_rotate %363 by %c127_i32_287 dim 1 : vector<24x128xf32>, i32 -> vector<24x128xf32>
    %c2_288 = arith.constant 2 : index
    %c0_289 = arith.constant 0 : index
    %c0_290 = arith.constant 0 : index
    %374 = vector.load %arg2[%c2_288, %c0_289, %c0_290] : memref<9x24x128xf32, #tpu.memory_space<vmem>>, vector<1x24x128xf32>
    %375 = vector.shape_cast %374 : vector<1x24x128xf32> to vector<24x128xf32>
    %376 = arith.mulf %373, %375 : vector<24x128xf32>
    %377 = arith.addf %372, %376 : vector<24x128xf32>
    %c1_i32_291 = arith.constant 1 : i32
    %378 = tpu.dynamic_rotate %361 by %c1_i32_291 dim 1 : vector<24x128xf32>, i32 -> vector<24x128xf32>
    %c3_292 = arith.constant 3 : index
    %c0_293 = arith.constant 0 : index
    %c0_294 = arith.constant 0 : index
    %379 = vector.load %arg2[%c3_292, %c0_293, %c0_294] : memref<9x24x128xf32, #tpu.memory_space<vmem>>, vector<1x24x128xf32>
    %380 = vector.shape_cast %379 : vector<1x24x128xf32> to vector<24x128xf32>
    %381 = arith.mulf %378, %380 : vector<24x128xf32>
    %382 = arith.addf %377, %381 : vector<24x128xf32>
    %c4_295 = arith.constant 4 : index
    %c0_296 = arith.constant 0 : index
    %c0_297 = arith.constant 0 : index
    %383 = vector.load %arg2[%c4_295, %c0_296, %c0_297] : memref<9x24x128xf32, #tpu.memory_space<vmem>>, vector<1x24x128xf32>
    %384 = vector.shape_cast %383 : vector<1x24x128xf32> to vector<24x128xf32>
    %385 = arith.mulf %361, %384 : vector<24x128xf32>
    %386 = arith.addf %382, %385 : vector<24x128xf32>
    %c127_i32_298 = arith.constant 127 : i32
    %387 = tpu.dynamic_rotate %361 by %c127_i32_298 dim 1 : vector<24x128xf32>, i32 -> vector<24x128xf32>
    %c5_299 = arith.constant 5 : index
    %c0_300 = arith.constant 0 : index
    %c0_301 = arith.constant 0 : index
    %388 = vector.load %arg2[%c5_299, %c0_300, %c0_301] : memref<9x24x128xf32, #tpu.memory_space<vmem>>, vector<1x24x128xf32>
    %389 = vector.shape_cast %388 : vector<1x24x128xf32> to vector<24x128xf32>
    %390 = arith.mulf %387, %389 : vector<24x128xf32>
    %391 = arith.addf %386, %390 : vector<24x128xf32>
    %c23_i32_302 = arith.constant 23 : i32
    %392 = tpu.dynamic_rotate %361 by %c23_i32_302 dim 0 : vector<24x128xf32>, i32 -> vector<24x128xf32>
    %c1_i32_303 = arith.constant 1 : i32
    %393 = tpu.dynamic_rotate %392 by %c1_i32_303 dim 1 : vector<24x128xf32>, i32 -> vector<24x128xf32>
    %c6_304 = arith.constant 6 : index
    %c0_305 = arith.constant 0 : index
    %c0_306 = arith.constant 0 : index
    %394 = vector.load %arg2[%c6_304, %c0_305, %c0_306] : memref<9x24x128xf32, #tpu.memory_space<vmem>>, vector<1x24x128xf32>
    %395 = vector.shape_cast %394 : vector<1x24x128xf32> to vector<24x128xf32>
    %396 = arith.mulf %393, %395 : vector<24x128xf32>
    %397 = arith.addf %391, %396 : vector<24x128xf32>
    %c7_307 = arith.constant 7 : index
    %c0_308 = arith.constant 0 : index
    %c0_309 = arith.constant 0 : index
    %398 = vector.load %arg2[%c7_307, %c0_308, %c0_309] : memref<9x24x128xf32, #tpu.memory_space<vmem>>, vector<1x24x128xf32>
    %399 = vector.shape_cast %398 : vector<1x24x128xf32> to vector<24x128xf32>
    %400 = arith.mulf %392, %399 : vector<24x128xf32>
    %401 = arith.addf %397, %400 : vector<24x128xf32>
    %c127_i32_310 = arith.constant 127 : i32
    %402 = tpu.dynamic_rotate %392 by %c127_i32_310 dim 1 : vector<24x128xf32>, i32 -> vector<24x128xf32>
    %c8_311 = arith.constant 8 : index
    %c0_312 = arith.constant 0 : index
    %c0_313 = arith.constant 0 : index
    %403 = vector.load %arg2[%c8_311, %c0_312, %c0_313] : memref<9x24x128xf32, #tpu.memory_space<vmem>>, vector<1x24x128xf32>
    %404 = vector.shape_cast %403 : vector<1x24x128xf32> to vector<24x128xf32>
    %405 = arith.mulf %402, %404 : vector<24x128xf32>
    %406 = arith.addf %401, %405 : vector<24x128xf32>
    %cst_314 = arith.constant 0.000000e+00 : f32
    %407 = vector.broadcast %cst_314 : f32 to vector<24x128xf32>
    %c1_i32_315 = arith.constant 1 : i32
    %408 = tpu.dynamic_rotate %406 by %c1_i32_315 dim 0 : vector<24x128xf32>, i32 -> vector<24x128xf32>
    %c1_i32_316 = arith.constant 1 : i32
    %409 = tpu.dynamic_rotate %408 by %c1_i32_316 dim 1 : vector<24x128xf32>, i32 -> vector<24x128xf32>
    %c0_317 = arith.constant 0 : index
    %c0_318 = arith.constant 0 : index
    %c0_319 = arith.constant 0 : index
    %410 = vector.load %arg2[%c0_317, %c0_318, %c0_319] : memref<9x24x128xf32, #tpu.memory_space<vmem>>, vector<1x24x128xf32>
    %411 = vector.shape_cast %410 : vector<1x24x128xf32> to vector<24x128xf32>
    %412 = arith.mulf %409, %411 : vector<24x128xf32>
    %413 = arith.addf %407, %412 : vector<24x128xf32>
    %c1_320 = arith.constant 1 : index
    %c0_321 = arith.constant 0 : index
    %c0_322 = arith.constant 0 : index
    %414 = vector.load %arg2[%c1_320, %c0_321, %c0_322] : memref<9x24x128xf32, #tpu.memory_space<vmem>>, vector<1x24x128xf32>
    %415 = vector.shape_cast %414 : vector<1x24x128xf32> to vector<24x128xf32>
    %416 = arith.mulf %408, %415 : vector<24x128xf32>
    %417 = arith.addf %413, %416 : vector<24x128xf32>
    %c127_i32_323 = arith.constant 127 : i32
    %418 = tpu.dynamic_rotate %408 by %c127_i32_323 dim 1 : vector<24x128xf32>, i32 -> vector<24x128xf32>
    %c2_324 = arith.constant 2 : index
    %c0_325 = arith.constant 0 : index
    %c0_326 = arith.constant 0 : index
    %419 = vector.load %arg2[%c2_324, %c0_325, %c0_326] : memref<9x24x128xf32, #tpu.memory_space<vmem>>, vector<1x24x128xf32>
    %420 = vector.shape_cast %419 : vector<1x24x128xf32> to vector<24x128xf32>
    %421 = arith.mulf %418, %420 : vector<24x128xf32>
    %422 = arith.addf %417, %421 : vector<24x128xf32>
    %c1_i32_327 = arith.constant 1 : i32
    %423 = tpu.dynamic_rotate %406 by %c1_i32_327 dim 1 : vector<24x128xf32>, i32 -> vector<24x128xf32>
    %c3_328 = arith.constant 3 : index
    %c0_329 = arith.constant 0 : index
    %c0_330 = arith.constant 0 : index
    %424 = vector.load %arg2[%c3_328, %c0_329, %c0_330] : memref<9x24x128xf32, #tpu.memory_space<vmem>>, vector<1x24x128xf32>
    %425 = vector.shape_cast %424 : vector<1x24x128xf32> to vector<24x128xf32>
    %426 = arith.mulf %423, %425 : vector<24x128xf32>
    %427 = arith.addf %422, %426 : vector<24x128xf32>
    %c4_331 = arith.constant 4 : index
    %c0_332 = arith.constant 0 : index
    %c0_333 = arith.constant 0 : index
    %428 = vector.load %arg2[%c4_331, %c0_332, %c0_333] : memref<9x24x128xf32, #tpu.memory_space<vmem>>, vector<1x24x128xf32>
    %429 = vector.shape_cast %428 : vector<1x24x128xf32> to vector<24x128xf32>
    %430 = arith.mulf %406, %429 : vector<24x128xf32>
    %431 = arith.addf %427, %430 : vector<24x128xf32>
    %c127_i32_334 = arith.constant 127 : i32
    %432 = tpu.dynamic_rotate %406 by %c127_i32_334 dim 1 : vector<24x128xf32>, i32 -> vector<24x128xf32>
    %c5_335 = arith.constant 5 : index
    %c0_336 = arith.constant 0 : index
    %c0_337 = arith.constant 0 : index
    %433 = vector.load %arg2[%c5_335, %c0_336, %c0_337] : memref<9x24x128xf32, #tpu.memory_space<vmem>>, vector<1x24x128xf32>
    %434 = vector.shape_cast %433 : vector<1x24x128xf32> to vector<24x128xf32>
    %435 = arith.mulf %432, %434 : vector<24x128xf32>
    %436 = arith.addf %431, %435 : vector<24x128xf32>
    %c23_i32_338 = arith.constant 23 : i32
    %437 = tpu.dynamic_rotate %406 by %c23_i32_338 dim 0 : vector<24x128xf32>, i32 -> vector<24x128xf32>
    %c1_i32_339 = arith.constant 1 : i32
    %438 = tpu.dynamic_rotate %437 by %c1_i32_339 dim 1 : vector<24x128xf32>, i32 -> vector<24x128xf32>
    %c6_340 = arith.constant 6 : index
    %c0_341 = arith.constant 0 : index
    %c0_342 = arith.constant 0 : index
    %439 = vector.load %arg2[%c6_340, %c0_341, %c0_342] : memref<9x24x128xf32, #tpu.memory_space<vmem>>, vector<1x24x128xf32>
    %440 = vector.shape_cast %439 : vector<1x24x128xf32> to vector<24x128xf32>
    %441 = arith.mulf %438, %440 : vector<24x128xf32>
    %442 = arith.addf %436, %441 : vector<24x128xf32>
    %c7_343 = arith.constant 7 : index
    %c0_344 = arith.constant 0 : index
    %c0_345 = arith.constant 0 : index
    %443 = vector.load %arg2[%c7_343, %c0_344, %c0_345] : memref<9x24x128xf32, #tpu.memory_space<vmem>>, vector<1x24x128xf32>
    %444 = vector.shape_cast %443 : vector<1x24x128xf32> to vector<24x128xf32>
    %445 = arith.mulf %437, %444 : vector<24x128xf32>
    %446 = arith.addf %442, %445 : vector<24x128xf32>
    %c127_i32_346 = arith.constant 127 : i32
    %447 = tpu.dynamic_rotate %437 by %c127_i32_346 dim 1 : vector<24x128xf32>, i32 -> vector<24x128xf32>
    %c8_347 = arith.constant 8 : index
    %c0_348 = arith.constant 0 : index
    %c0_349 = arith.constant 0 : index
    %448 = vector.load %arg2[%c8_347, %c0_348, %c0_349] : memref<9x24x128xf32, #tpu.memory_space<vmem>>, vector<1x24x128xf32>
    %449 = vector.shape_cast %448 : vector<1x24x128xf32> to vector<24x128xf32>
    %450 = arith.mulf %447, %449 : vector<24x128xf32>
    %451 = arith.addf %446, %450 : vector<24x128xf32>
    %cst_350 = arith.constant 0.000000e+00 : f32
    %452 = vector.broadcast %cst_350 : f32 to vector<24x128xf32>
    %453 = arith.subf %452, %451 : vector<24x128xf32>
    %454 = math.exp %453 : vector<24x128xf32>
    %cst_351 = arith.constant 1.000000e+00 : f32
    %455 = vector.broadcast %cst_351 : f32 to vector<24x128xf32>
    %456 = arith.addf %455, %454 : vector<24x128xf32>
    %457 = tpu.reciprocal %456 {approx = true} : vector<24x128xf32> -> vector<24x128xf32>
    %c0_352 = arith.constant 0 : index
    %c0_353 = arith.constant 0 : index
    %c0_354 = arith.constant 0 : index
    %458 = vector.load %arg3[%c0_352, %c0_353, %c0_354] : memref<1x24x128xf32, #tpu.memory_space<vmem>>, vector<1x24x128xf32>
    %459 = vector.shape_cast %458 : vector<1x24x128xf32> to vector<24x128xf32>
    %460 = vector.shape_cast %457 : vector<24x128xf32> to vector<1x24x128xf32>
    tpu.vector_store %arg3[%c0_352, %c0_353, %c0_354], %460 {strides = array<i32>} : memref<1x24x128xf32, #tpu.memory_space<vmem>>, vector<1x24x128xf32>,
    return
  }
  func.func @transform_0(%arg0: i32) -> (i32, i32, i32) {
    %c0_i32 = arith.constant 0 : i32
    %c0_i32_0 = arith.constant 0 : i32
    %c0_i32_1 = arith.constant 0 : i32
    return %arg0, %c0_i32, %c0_i32_0 : i32, i32, i32
  }
  func.func @transform_1(%arg0: i32) -> (i32, i32, i32) {
    %c0_i32 = arith.constant 0 : i32
    %c0_i32_0 = arith.constant 0 : i32
    %c0_i32_1 = arith.constant 0 : i32
    %c0_i32_2 = arith.constant 0 : i32
    return %c0_i32, %c0_i32_0, %c0_i32_1 : i32, i32, i32
  }
  func.func @transform_2(%arg0: i32) -> (i32, i32, i32) {
    %c0_i32 = arith.constant 0 : i32
    %c0_i32_0 = arith.constant 0 : i32
    %c0_i32_1 = arith.constant 0 : i32
    return %arg0, %c0_i32, %c0_i32_0 : i32, i32, i32
  }
}

</mosaic_0001>

<bundles_post_ra>
// kernel: tpu_custom_call.1
= control target key start
LH: loop header
LB: loop body
LE: loop exit
PB: predicated region body
PF: predicated region fallthrough
CT: control target
= control target key end

     0   :  { %7 = vsyncpa [#allocation3], 0  ;;  %s2838_s0 = inlined_call_operand.hbm [shape: f32[3,24,128], index: 0, kind: input, shape index: {}]   ;;  %s2839_s1 = inlined_call_operand.hbm [shape: f32[9,24,128], index: 1, kind: input, shape index: {}]   ;;  %s2840_s2 = inlined_call_operand.hbm [shape: f32[3,24,128], index: 2, kind: output, shape index: {}]  }
   0x1   :  { %9 = vsyncpa [#allocation3 + $0x1], 0 }
   0x2   :  { %10 = vsyncpa [#allocation6], 0 }
   0x3   :  { %11 = vsyncpa [#allocation4], 0 }
   0x4   :  { %13 = vsyncpa [#allocation4 + $0x1], 0  ;;  %s1618_s9 = smov 0   ;;  %s1620_s10 = smov 0  }
   0x5   :  { %s1622_s11 = smov 0   ;;  %s1624_s12 = smov 0  }
   0x6 LB: > { %s1639_s13 = sadd.s32 4294967295, %s1592_s12   ;;  %s1354_s14 = sadd.s32 4294967294, %s1592_s12   ;;  %s1592_s12 = sphi %s1624_s12, %s2861_s12   ;;  %s1588_s11 = sphi %s1622_s11, %s2860_s11   ;;  %s1584_s10 = sphi %s1620_s10, %s2859_s10   ;;  %s1580_s9 = sphi %s1618_s9, %s2858_s9  }
   0x7   : > { %p39_p0 = scmp.ne.s32.totalorder %s1584_s10, %s1580_s9  ;;  %p2841_p1 = scmp.eq.s32.totalorder %s1639_s13, 0 }
   0x8   : > { %p90_p3 = scmp.eq.s32.totalorder %s1354_s14, 2  ;;  %p1355_p5 = scmp.ge.s32.totalorder %s1592_s12, 1 }
   0x9   : > { %p1648_p4 = por %p2841_p1, %p39_p0  ;;  %p97_p7 = scmp.lt.s32.totalorder %s1592_s12, 4 }
   0xa   : > { %p1653_p6 = por %p90_p3, %p39_p0  ;;  %s1594_s18 = smov [#allocation5]  }
   0xb   : > { %s2845_s15 = scalar_select %p1648_p4, 1, 0 }
   0xc   : > { %s2846_s16 = scalar_select %p1653_p6, 1, 0 }
   0xd   : > { %p1658_p8 = pnand %p1355_p5, %p97_p7  ;;  %s109_s19 = sshll.u32 %s1594_s18, 4  ;;  %s110_s19 = int_to_ptr.vmem [resolvable:$true] %s109_s19 }
   0xe   : > { %s1671_s21 = sadd.s32 1, %s1592_s12   ;;  %s26_s22 = sadd.s32 1, %s1588_s11 }
   0xf   : > { %s2847_s17 = scalar_select %p1658_p8, 1, 0 }
  0x10   : > { %p1376_p9 = pneg %p1658_p8  ;;  %s23_s23 = ssub.s32 %s1592_s12, %s1671_s21 }
  0x11   : > { %s1481_s24 = scalar_lea.vmem %s110_s19, 3456  ;;  %p1489_p3 = scmp.lt.s32.totalorder %s110_s19, %s110_s19 }
  0x12   : > { %p1666_p10 = pnand %p1376_p9, %p2841_p1  ;;  %p1482_p12 = scmp.ne.s32.totalorder %s110_s19, %s1481_s24 }
  0x13   : > { %p1490_p5 = scmp.lt.s32.totalorder %s1481_s24, %s1481_s24 }
  0x14   : > { %p1472_p11 = pneg %p1666_p10 }
  0x15   : > { %p1491_p7 = por %p1490_p5, %p1489_p3 }
  0x16   : > { %p1484_p13 = pnand %p1482_p12, %p1472_p11 }
  0x18   : > { %p1485_p0 = pneg %p1484_p13 }
  0x1a   : > { %p1492_p2 = pnand %p1491_p7, %p1485_p0 }
  0x1c   : > { %1495 = shalt.err (!%p1492_p2)
}
  0x1d   : > { %s1595_s25 = smov 128   ;;  %s1596_s26 = smov 8  }
  0x1e   : > { %1379 = dma.hbm_to_vmem [thread:$0]  (!%p1666_p10), %s2839_s1, 3456, %s110_s19, [#allocation6], %s1595_s25, %s1595_s25, %s1596_s26  }
  0x1f   : > { %p24_p2 = scmp.eq.s32.totalorder %s23_s23, 0  ;;  %p33_p9 = scmp.ne.s32.totalorder %s1588_s11, %s1584_s10 }
  0x20   : > { %p34_p11 = scmp.eq.s32.totalorder %s1592_s12, 0  ;;  %p1389_p12 = scmp.lt.s32.totalorder %s1592_s12, 3 }
  0x21   : > { %s1691_s29 = scalar_select %p24_p2, %s1588_s11, %s26_s22  }
  0x22   : > { %p35_p13 = por %p34_p11, %p33_p9  ;;  %p2849_p0 = scmp.eq.s32.totalorder %s1639_s13, 2 }
  0x23   : > { %s123_s3 = sand.u32 1, %s1588_s11   ;;  %s1365_s4 = smul.u32 384, %s1592_s12 }
  0x24   : > { %p1695_p3 = por %p2849_p0, %p33_p9  ;;  %s1364_s5 = smul.u32 24, %s123_s3 }
  0x25   : > { %p1701_p5 = pnand %p1389_p12, %p35_p13  ;;  %s1708_s14 = scalar_lea.hbm %s2838_s0, %s1365_s4 }
  0x26   : > { %s2850_s30 = scalar_select %p1695_p3, 1, 0 }
  0x27   : > { %s127_s18 = scalar_lea.vmem [#allocation2], %s1364_s5  ;;  %s1712_s20 = scalar_lea.sflag [#allocation3], %s123_s3 }
  0x28   : > { %s134_s19 = sshll.u32 %s127_s18, 4  ;;  %s1496_s22 = scalar_lea.hbm %s1708_s14, 384  ;;  %s1710_s19 = int_to_ptr.vmem [resolvable:$true] %s134_s19 }
  0x29   : > { %p1497_p10 = scmp.ne.s32.totalorder %s1708_s14, %s1496_s22  ;;  %p1498_p7 = pneg %p1701_p5 }
  0x2a   : > { %s1501_s27 = scalar_lea.hbm %s2838_s0, 1152  ;;  %p1502_p11 = scmp.lt.s32.totalorder %s1708_s14, %s2838_s0 }
  0x2b   : > { %p1499_p2 = pnand %p1498_p7, %p1497_p10  ;;  %p1503_p12 = scmp.lt.s32.totalorder %s1501_s27, %s1496_s22 }
  0x2d   : > { %p1500_p9 = pneg %p1499_p2  ;;  %p1504_p13 = por %p1503_p12, %p1502_p11 }
  0x2f   : > { %p1505_p0 = pnand %p1504_p13, %p1500_p9 }
  0x31   : > { %1508 = shalt.err (!%p1505_p0)
}
  0x32   : > { %s1509_s3 = scalar_lea.vmem %s1710_s19, 384  ;;  %s1597_s5 = smov [#allocation2]  }
  0x33   : > { %p1510_p1 = scmp.ne.s32.totalorder %s1710_s19, %s1509_s3  ;;  %s1514_s7 = sshll.u32 %s1597_s5, 4  ;;  %s1515_s7 = int_to_ptr.vmem [resolvable:$false] %s1514_s7 }
  0x34   : > { %s1516_s8 = scalar_lea.vmem %s1515_s7, 768  ;;  %p1517_p2 = scmp.lt.s32.totalorder %s1710_s19, %s1515_s7 }
  0x35   : > { %p1512_p6 = pnand %p1510_p1, %p1498_p7  ;;  %p1518_p3 = scmp.lt.s32.totalorder %s1516_s8, %s1509_s3 }
  0x37   : > { %p1513_p10 = pneg %p1512_p6  ;;  %p1519_p4 = por %p1518_p3, %p1517_p2 }
  0x39   : > { %p1520_p8 = pnand %p1519_p4, %p1513_p10 }
  0x3b   : > { %1523 = shalt.err (!%p1520_p8)
}
  0x3c   : > { %1383 = dma.hbm_to_vmem [thread:$0]  (!%p1701_p5), %s1708_s14, 384, %s1710_s19, %s1712_s20, %s1595_s25, %s1595_s25, %s1596_s26  }
  0x3d   : > { %p2852_p1 = scmp.ne.s32.totalorder %s2847_s17, 0 }
  0x3e   : > { %s1739_s18 = sand.u32 (!%p2852_p1), 1, %s1584_s10   ;;  %p2853_p4 = scmp.ne.s32.totalorder (!%p2852_p1), %s2845_s15, 0 }
  0x3f   : > { %146 = sbr.rel (%p2852_p1) target bundleno = 1620 (0x654), region = 28  ;;  %s149_s23 = scalar_lea.sflag (!%p2852_p1), [#allocation3], %s1739_s18 }
  0x40   : > { %s1366_s22 = smul.u32 (!%p2852_p1), 24, %s1739_s18 }
  0x42   : > { %s152_s6 = scalar_lea.vmem (!%p2852_p1), [#allocation2], %s1366_s22 }
  0x44   : > { %1567 = dma.done.wait (%p2853_p4), %s149_s23, 384  }
  0x45   : > { %1569 = vsyncadd (%p2853_p4), %s149_s23, 4294966912  ;;  %p2854_p6 = scmp.eq.s32.totalorder %s1639_s13, 0 }
  0x47   : > { %1571 = dma.done.wait (%p2854_p6), [#allocation6], 3456   ;;  %p2855_p8 = pmov %p2854_p6 }
  0x48   : > { %v183_v0 = vlaneseq  ;;  %v1755_v2 = vld [vmem:[%s152_s6 + $0x8] sm:$0xff]  ;;  %v1757_v3 = vld [vmem:[%s152_s6 + $0x10] sm:$0xff]  ;;  %v1762_v6 = vld [vmem:[%s152_s6] sm:$0xff]  ;;  %s1598_s15 = smov 1   ;;  %s1599_s17 = smov 127  }
  0x49   : > { %1573 = vsyncadd (%p2855_p8), [#allocation6], 4294963840  ;;  %v181_v4 = vrot.slane %v1755_v2, 7  ;;  %v182_v5 = vrot.slane %v1757_v3, 7  ;;  %v180_v7 = vrot.slane %v1762_v6, 7  ;;  %v273_v11 = vrot.slane %v1755_v2, 1 }
  0x4a   : > { %v1753_v1 = vshrl.u32 %v183_v0, 7  ;;  %v274_v12 = vrot.slane %v1757_v3, 1  ;;  %v272_v13 = vrot.slane %v1762_v6, 1  ;;  %v1817_v19 = vld [vmem:[#allocation5 + $0x20] sm:$0xff]  ;;  %v1819_v21 = vld [vmem:[#allocation5 + $0x8] sm:$0xff]  ;;  %v1821_v22 = vld [vmem:[#allocation5 + $0x18] sm:$0xff] }
  0x4b   : > { %v1823_v23 = vld [vmem:[#allocation5] sm:$0xff]  ;;  %v1826_v26 = vld [vmem:[#allocation5 + $0x30] sm:$0xff]  ;;  %v1829_v28 = vld [vmem:[#allocation5 + $0x38] sm:$0xff]  ;;  %s1367_s25 = smul.u32 384, %s1639_s13  ;;  %s176_s26 = scalar_lea.vmem [#allocation7], %s1366_s22 }
  0x4c   : > { %vm185_vm0 = vcmp.lt.s32.totalorder %v1753_v1, 1  ;;  %vm275_vm1 = vcmp.lt.s32.totalorder %v1753_v1, 7  ;;  %v1833_v32 = vld [vmem:[#allocation5 + $0x28] sm:$0xff]  ;;  %v1835_v33 = vld [vmem:[#allocation5 + $0x10] sm:$0xff]  ;;  %v1843_v40 = vld [vmem:[#allocation5 + $0x40] sm:$0xff]  ;;  %s1271_s14 = sshll.u32 %s176_s26, 4  ;;  %s2796_s14 = int_to_ptr.vmem [resolvable:$true] %s1271_s14 }
  0x4d   : > { %v186_v8 = vsel %vm185_vm0, %v181_v4, %v182_v5  ;;  %v188_v9 = vsel %vm185_vm0, %v182_v5, %v180_v7  ;;  %v187_v10 = vsel %vm185_vm0, %v180_v7, %v181_v4  ;;  %v1795_v14 = vsel %vm275_vm1, %v273_v11, %v274_v12  ;;  %v1839_v37 = vld [vmem:[#allocation5 + $0x50] sm:$0xff]  ;;  %v1841_v38 = vld [vmem:[#allocation5 + $0x68] sm:$0xff]  ;;  %v1847_v42 = vld [vmem:[#allocation5 + $0x60] sm:$0xff]  ;;  %s2794_s24 = scalar_lea.hbm %s2840_s2, %s1367_s25  ;;  %s1258_s13 = scalar_lea.sflag [#allocation4], %s1739_s18 }
  0x4e   : > { %193 = vrot.lane.b32.xlu1 %v186_v8, %s1598_s15  ;;  %189 = vrot.lane.b32.xlu0 %v188_v9, %s1598_s15  ;;  %v1799_v15 = vsel %vm275_vm1, %v272_v13, %v273_v11  ;;  %v1807_v16 = vsel %vm275_vm1, %v274_v12, %v272_v13  ;;  %v209_v25 = vmul.f32 %v1817_v19, %v187_v10  ;;  %v1845_v41 = vld [vmem:[#allocation5 + $0x48] sm:$0xff]  ;;  %v1858_v56 = vld [vmem:[#allocation5 + $0x58] sm:$0xff]  ;;  %v1860_v57 = vld [vmem:[#allocation5 + $0x70] sm:$0xff]  ;;  %s1524_s27 = scalar_lea.vmem %s2796_s14, 384  ;;  %p2856_p5 = scmp.ne.s32.totalorder %s2850_s30, 0 }
  0x4f   : > { %v208_v29 = vmul.f32 %v1821_v22, %v188_v9  ;;  %v210_v43 = vmul.f32 %v1833_v32, %v186_v8  ;;  %v251_v50 = vmul.f32 %v1841_v38, %v1755_v2  ;;  %v250_v54 = vmul.f32 %v1847_v42, %v1762_v6  ;;  %v1865_v5 = vld [vmem:[#allocation5 + $0x78] sm:$0xff]  ;;  %p1525_p3 = scmp.ne.s32.totalorder %s2796_s14, %s1524_s27  ;;  %s1600_s28 = smov [#allocation7]  }
  0x50   : > { %v252_v4 = vmul.f32 %v1860_v57, %v1757_v3  ;;  %s1528_s4 = sshll.u32 %s1600_s28, 4  ;;  %s1529_s4 = int_to_ptr.vmem [resolvable:$false] %s1528_s4 }
  0x51   : > { %p1526_p7 = pnand %p1525_p3, %p2856_p5  ;;  %s1530_s3 = scalar_lea.vmem %s1529_s4, 768 }
  0x52   : > { %214 = vrot.lane.b32.xlu1 %v188_v9, %s1599_s17  ;;  %191 = vrot.lane.b32.xlu0 %v187_v10, %s1598_s15  ;;  %p1531_p11 = scmp.lt.s32.totalorder %s2796_s14, %s1529_s4  ;;  %p1532_p12 = scmp.lt.s32.totalorder %s1530_s3, %s1524_s27 }
  0x53   : > { %p1527_p9 = pneg %p1526_p7 }
  0x54   : > { %p1533_p13 = por %p1532_p12, %p1531_p11 }
  0x56   : > { %218 = vrot.lane.b32.xlu1 %v186_v8, %s1599_s17  ;;  %216 = vrot.lane.b32.xlu0 %v187_v10, %s1599_s17  ;;  %v1869_v10 = vld [vmem:[#allocation5 + $0xb0] sm:$0xff]  ;;  %p1534_p0 = pnand %p1533_p13, %p1527_p9 }
  0x5a   : > { %232 = vrot.lane.b32.xlu1 %v1755_v2, %s1598_s15  ;;  %230 = vrot.lane.b32.xlu0 %v1762_v6, %s1598_s15 }
  0x5e   : > { %256 = vrot.lane.b32.xlu1 %v1762_v6, %s1599_s17  ;;  %234 = vrot.lane.b32.xlu0 %v1757_v3, %s1598_s15  ;;  %v1867_v6 = vld [vmem:[#allocation5 + $0x80] sm:$0xff] }
  0x62   : > { %260 = vrot.lane.b32.xlu1 %v1757_v3, %s1599_s17  ;;  %258 = vrot.lane.b32.xlu0 %v1755_v2, %s1599_s17  ;;  %v1879_v3 = vld [vmem:[#allocation5 + $0x90] sm:$0xff] }
  0x66   : > { %281 = vrot.lane.b32.xlu1 %v1795_v14, %s1598_s15  ;;  %279 = vrot.lane.b32.xlu0 %v1799_v15, %s1598_s15 }
  0x6a   : > { %305 = vrot.lane.b32.xlu1 %v1799_v15, %s1599_s17  ;;  %283 = vrot.lane.b32.xlu0 %v1807_v16, %s1598_s15 }
  0x6e   : > { %309 = vrot.lane.b32.xlu1 %v1807_v16, %s1599_s17  ;;  %307 = vrot.lane.b32.xlu0 %v1795_v14, %s1599_s17 }
  0xc0   : > { %v194_v17 = vpop.permute.xlu1 %193  ;;  %v190_v18 = vpop.permute.xlu0 %189 }
  0xc1   : > { %v198_v30 = vmul.f32 %v1823_v23, %v190_v18  ;;  %v200_v44 = vmul.f32 %v1835_v33, %v194_v17  ;;  %v1873_v17 = vld [vmem:[#allocation5 + $0x98] sm:$0xff]  ;;  %v1875_v18 = vld [vmem:[#allocation5 + $0xa8] sm:$0xff] }
  0xc3   : > { %v211_v45 = vadd.f32 %v208_v29, %v198_v30  ;;  %v213_v58 = vadd.f32 %v210_v43, %v200_v44  ;;  %v1890_v43 = vld [vmem:[#allocation5 + $0xb8] sm:$0xff] }
  0xc4   : > { %v215_v20 = vpop.permute.xlu1 %214  ;;  %v192_v24 = vpop.permute.xlu0 %191 }
  0xc5   : > { %v199_v27 = vmul.f32 %v1819_v21, %v192_v24  ;;  %v224_v35 = vmul.f32 %v1826_v26, %v215_v20  ;;  %v1877_v20 = vld [vmem:[#allocation5 + $0x88] sm:$0xff] }
  0xc7   : > { %v212_v39 = vadd.f32 %v209_v25, %v199_v27  ;;  %v227_v51 = vadd.f32 %v224_v35, %v211_v45  ;;  %v300_v25 = vmul.f32 %v1869_v10, %v1795_v14  ;;  %v1892_v45 = vld [vmem:[#allocation5 + $0xa0] sm:$0xff] }
  0xc8   : > { %v219_v31 = vpop.permute.xlu1 %218  ;;  %v217_v34 = vpop.permute.xlu0 %216 }
  0xc9   : > { %v225_v36 = vmul.f32 %v1829_v28, %v217_v34  ;;  %v226_v52 = vmul.f32 %v1843_v40, %v219_v31  ;;  %v299_v31 = vmul.f32 %v1875_v18, %v1799_v15  ;;  %v301_v15 = vmul.f32 %v1890_v43, %v1807_v16 }
  0xcb   : > { %v228_v47 = vadd.f32 %v225_v36, %v212_v39  ;;  %v229_v63 = vadd.f32 %v226_v52, %v213_v58  ;;  %v1888_v39 = vld [vmem:[#allocation5 + $0xc0] sm:$0xff] }
  0xcc   : > { %v233_v46 = vpop.permute.xlu1 %232  ;;  %v231_v49 = vpop.permute.xlu0 %230 }
  0xcd   : > { %v241_v48 = vmul.f32 %v1839_v37, %v233_v46  ;;  %v240_v53 = vmul.f32 %v1845_v41, %v231_v49 }
  0xcf   : > { %v244_v55 = vadd.f32 %v241_v48, %v228_v47  ;;  %v243_v59 = vadd.f32 %v240_v53, %v227_v51  ;;  %v1898_v53 = vld [vmem:[#allocation5 + $0xd0] sm:$0xff] }
  0xd0   : > { %v257_v60 = vpop.permute.xlu1 %256  ;;  %v235_v61 = vpop.permute.xlu0 %234 }
  0xd1   : > { %v254_v62 = vadd.f32 %v251_v50, %v244_v55  ;;  %v253_v0 = vadd.f32 %v250_v54, %v243_v59  ;;  %v242_v2 = vmul.f32 %v1858_v56, %v235_v61  ;;  %v266_v11 = vmul.f32 %v1865_v5, %v257_v60  ;;  %v1900_v54 = vld [vmem:[#allocation5 + $0xc8] sm:$0xff] }
  0xd3   : > { %v245_v7 = vadd.f32 %v242_v2, %v229_v63  ;;  %v269_v34 = vadd.f32 %v266_v11, %v253_v0 }
  0xd4   : > { %v261_v8 = vpop.permute.xlu1 %260  ;;  %v259_v9 = vpop.permute.xlu0 %258 }
  0xd5   : > { %v255_v12 = vadd.f32 %v252_v4, %v245_v7  ;;  %v267_v13 = vmul.f32 %v1867_v6, %v259_v9  ;;  %v268_v35 = vmul.f32 %v1877_v20, %v261_v8 }
  0xd7   : > { %v270_v27 = vadd.f32 %v267_v13, %v254_v62  ;;  %v271_v50 = vadd.f32 %v268_v35, %v255_v12 }
  0xd8   : > { %v282_v24 = vpop.permute.xlu1 %281  ;;  %v280_v30 = vpop.permute.xlu0 %279 }
  0xd9   : > { %v290_v29 = vmul.f32 %v1873_v17, %v282_v24  ;;  %v289_v36 = vmul.f32 %v1879_v3, %v280_v30 }
  0xdb   : > { %v293_v44 = vadd.f32 %v290_v29, %v270_v27  ;;  %v292_v14 = vadd.f32 %v289_v36, %v269_v34 }
  0xdc   : > { %v306_v46 = vpop.permute.xlu1 %305  ;;  %v284_v48 = vpop.permute.xlu0 %283 }
  0xdd   : > { %v315_v47 = vmul.f32 %v1888_v39, %v306_v46  ;;  %v303_v49 = vadd.f32 %v300_v25, %v293_v44  ;;  %v302_v51 = vadd.f32 %v299_v31, %v292_v14  ;;  %v291_v52 = vmul.f32 %v1892_v45, %v284_v48 }
  0xdf   : > { %v1902_v55 = vadd.f32 %v315_v47, %v302_v51  ;;  %v294_v58 = vadd.f32 %v291_v52, %v271_v50 }
  0xe0   : > { %v310_v59 = vpop.permute.xlu1 %309  ;;  %v308_v61 = vpop.permute.xlu0 %307 }
  0xe1   : > { %v317_v60 = vmul.f32 %v1898_v53, %v310_v59  ;;  %v304_v62 = vadd.f32 %v301_v15, %v294_v58  ;;  %v316_v63 = vmul.f32 %v1900_v54, %v308_v61  ;;  %357 = vrot.lane.b32.xlu0 %v1902_v55, %s1598_s15  ;;  %v321_v2 = vrot.slane %v1902_v55, 7 }
  0xe2   : > { %v387_v4 = vrot.slane %v1902_v55, 1 }
  0xe3   : > { %v1908_v16 = vadd.f32 %v317_v60, %v304_v62  ;;  %v319_v0 = vadd.f32 %v316_v63, %v303_v49 }
  0xe5   : > { %361 = vrot.lane.b32.xlu0 %v1908_v16, %s1598_s15  ;;  %359 = vrot.lane.b32.xlu1 %v319_v0, %s1598_s15  ;;  %v323_v7 = vrot.slane %v1908_v16, 7  ;;  %v322_v8 = vrot.slane %v319_v0, 7  ;;  %v388_v9 = vrot.slane %v319_v0, 1  ;;  %v389_v11 = vrot.slane %v1908_v16, 1 }
  0xe7   : > { %v326_v12 = vsel %vm185_vm0, %v323_v7, %v321_v2  ;;  %v325_v13 = vsel %vm185_vm0, %v321_v2, %v322_v8  ;;  %v324_v24 = vsel %vm185_vm0, %v322_v8, %v323_v7  ;;  %v1925_v25 = vsel %vm275_vm1, %v387_v4, %v388_v9 }
  0xe8   : > { %v1932_v27 = vsel %vm275_vm1, %v388_v9, %v389_v11  ;;  %v1936_v29 = vsel %vm275_vm1, %v389_v11, %v387_v4  ;;  %v339_v15 = vmul.f32 %v326_v12, %v1821_v22  ;;  %v340_v50 = vmul.f32 %v325_v13, %v1817_v19 }
  0xe9   : > { %377 = vrot.lane.b32.xlu0 %v319_v0, %s1599_s17  ;;  %375 = vrot.lane.b32.xlu1 %v1902_v55, %s1599_s17  ;;  %v341_v63 = vmul.f32 %v324_v24, %v1833_v32  ;;  %v369_v11 = vmul.f32 %v1902_v55, %v1847_v42 }
  0xed   : > { %327 = vrot.lane.b32.xlu0 %v326_v12, %s1598_s15  ;;  %379 = vrot.lane.b32.xlu1 %v1908_v16, %s1599_s17 }
  0xf1   : > { %329 = vrot.lane.b32.xlu1 %v325_v13, %s1598_s15  ;;  %331 = vrot.lane.b32.xlu0 %v324_v24, %s1598_s15 }
  0xf5   : > { %345 = vrot.lane.b32.xlu1 %v326_v12, %s1599_s17  ;;  %347 = vrot.lane.b32.xlu0 %v325_v13, %s1599_s17  ;;  %v370_v13 = vmul.f32 %v319_v0, %v1841_v38  ;;  %v371_v0 = vmul.f32 %v1908_v16, %v1860_v57 }
  0xf9   : > { %349 = vrot.lane.b32.xlu1 %v324_v24, %s1599_s17  ;;  %393 = vrot.lane.b32.xlu0 %v1925_v25, %s1598_s15 }
  0xfd   : > { %395 = vrot.lane.b32.xlu1 %v1932_v27, %s1598_s15  ;;  %397 = vrot.lane.b32.xlu0 %v1936_v29, %s1598_s15 }
 0x101   : > { %411 = vrot.lane.b32.xlu1 %v1925_v25, %s1599_s17  ;;  %413 = vrot.lane.b32.xlu0 %v1932_v27, %s1599_s17 }
 0x105   : > { %415 = vrot.lane.b32.xlu1 %v1936_v29, %s1599_s17 }
 0x153   : > { %v358_v30 = vpop.permute.xlu0 %357 }
 0x154   : > { %v363_v2 = vmul.f32 %v358_v30, %v1845_v41 }
 0x157   : > { %v362_v31 = vpop.permute.xlu0 %361  ;;  %v360_v34 = vpop.permute.xlu1 %359 }
 0x158   : > { %v364_v4 = vmul.f32 %v360_v34, %v1839_v37  ;;  %v365_v24 = vmul.f32 %v362_v31, %v1858_v56  ;;  %v405_v31 = vmul.f32 %v1925_v25, %v1875_v18  ;;  %v407_v25 = vmul.f32 %v1936_v29, %v1890_v43 }
 0x15b   : > { %v378_v35 = vpop.permute.xlu0 %377  ;;  %v376_v36 = vpop.permute.xlu1 %375 }
 0x15c   : > { %v382_v30 = vmul.f32 %v378_v35, %v1867_v6  ;;  %v381_v34 = vmul.f32 %v376_v36, %v1865_v5  ;;  %v406_v35 = vmul.f32 %v1932_v27, %v1869_v10 }
 0x15f   : > { %v328_v44 = vpop.permute.xlu0 %327  ;;  %v380_v14 = vpop.permute.xlu1 %379 }
 0x160   : > { %v333_v46 = vmul.f32 %v328_v44, %v1823_v23  ;;  %v383_v36 = vmul.f32 %v380_v14, %v1877_v20 }
 0x162   : > { %v342_v51 = vadd.f32 %v339_v15, %v333_v46 }
 0x163   : > { %v330_v47 = vpop.permute.xlu1 %329  ;;  %v332_v48 = vpop.permute.xlu0 %331 }
 0x164   : > { %v334_v49 = vmul.f32 %v330_v47, %v1819_v21  ;;  %v335_v60 = vmul.f32 %v332_v48, %v1835_v33 }
 0x166   : > { %v343_v59 = vadd.f32 %v340_v50, %v334_v49  ;;  %v344_v44 = vadd.f32 %v341_v63, %v335_v60 }
 0x167   : > { %v346_v52 = vpop.permute.xlu1 %345  ;;  %v348_v58 = vpop.permute.xlu0 %347 }
 0x168   : > { %v351_v61 = vmul.f32 %v346_v52, %v1826_v26  ;;  %v352_v62 = vmul.f32 %v348_v58, %v1829_v28 }
 0x16a   : > { %v354_v7 = vadd.f32 %v351_v61, %v342_v51  ;;  %v355_v8 = vadd.f32 %v352_v62, %v343_v59 }
 0x16b   : > { %v350_v9 = vpop.permute.xlu1 %349  ;;  %v394_v12 = vpop.permute.xlu0 %393 }
 0x16c   : > { %v366_v46 = vadd.f32 %v363_v2, %v354_v7  ;;  %v367_v47 = vadd.f32 %v364_v4, %v355_v8  ;;  %v353_v48 = vmul.f32 %v350_v9, %v1843_v40  ;;  %v399_v51 = vmul.f32 %v394_v12, %v1879_v3 }
 0x16e   : > { %v356_v49 = vadd.f32 %v353_v48, %v344_v44  ;;  %v372_v15 = vadd.f32 %v369_v11, %v366_v46  ;;  %v373_v50 = vadd.f32 %v370_v13, %v367_v47 }
 0x16f   : > { %v396_v55 = vpop.permute.xlu1 %395  ;;  %v398_v52 = vpop.permute.xlu0 %397 }
 0x170   : > { %v368_v58 = vadd.f32 %v365_v24, %v356_v49  ;;  %v384_v59 = vadd.f32 %v381_v34, %v372_v15  ;;  %v385_v60 = vadd.f32 %v382_v30, %v373_v50  ;;  %v400_v61 = vmul.f32 %v396_v55, %v1873_v17 }
 0x171   : > { %v401_v4 = vmul.f32 %v398_v52, %v1892_v45 }
 0x172   : > { %v402_v62 = vadd.f32 %v399_v51, %v384_v59  ;;  %v403_v63 = vadd.f32 %v400_v61, %v385_v60  ;;  %v374_v2 = vadd.f32 %v371_v0, %v368_v58 }
 0x173   : > { %v412_v16 = vpop.permute.xlu1 %411  ;;  %v414_v7 = vpop.permute.xlu0 %413 }
 0x174   : > { %v386_v8 = vadd.f32 %v383_v36, %v374_v2  ;;  %v408_v9 = vadd.f32 %v405_v31, %v402_v62  ;;  %v417_v11 = vmul.f32 %v412_v16, %v1888_v39  ;;  %v409_v12 = vadd.f32 %v406_v35, %v403_v63 }
 0x175   : > { %v418_v13 = vmul.f32 %v414_v7, %v1900_v54 }
 0x176   : > { %v404_v27 = vadd.f32 %v401_v4, %v386_v8  ;;  %v1989_v44 = vadd.f32 %v417_v11, %v408_v9 }
 0x177   : > { %v1991_v14 = vadd.f32 %v418_v13, %v409_v12  ;;  %v416_v46 = vpop.permute.xlu1 %415 }
 0x178   : > { %v410_v47 = vadd.f32 %v407_v25, %v404_v27  ;;  %v419_v48 = vmul.f32 %v416_v46, %v1898_v53  ;;  %459 = vrot.lane.b32.xlu0 %v1989_v44, %s1598_s15  ;;  %v423_v24 = vrot.slane %v1989_v44, 7  ;;  %v489_v30 = vrot.slane %v1989_v44, 1 }
 0x179   : > { %461 = vrot.lane.b32.xlu1 %v1991_v14, %s1598_s15  ;;  %v424_v29 = vrot.slane %v1991_v14, 7  ;;  %v490_v34 = vrot.slane %v1991_v14, 1 }
 0x17a   : > { %v2002_v49 = vadd.f32 %v419_v48, %v410_v47 }
 0x17b   : > { %v427_v15 = vsel %vm185_vm0, %v423_v24, %v424_v29  ;;  %v2008_v50 = vsel %vm275_vm1, %v489_v30, %v490_v34 }
 0x17c   : > { %463 = vrot.lane.b32.xlu0 %v2002_v49, %s1598_s15  ;;  %v425_v51 = vrot.slane %v2002_v49, 7  ;;  %v491_v55 = vrot.slane %v2002_v49, 1  ;;  %v442_v25 = vmul.f32 %v427_v15, %v1817_v19 }
 0x17d   : > { %477 = vrot.lane.b32.xlu1 %v1989_v44, %s1599_s17 }
 0x17e   : > { %v428_v0 = vsel %vm185_vm0, %v425_v51, %v423_v24  ;;  %v426_v52 = vsel %vm185_vm0, %v424_v29, %v425_v51  ;;  %v2022_v58 = vsel %vm275_vm1, %v490_v34, %v491_v55  ;;  %v2026_v59 = vsel %vm275_vm1, %v491_v55, %v489_v30 }
 0x17f   : > { %v441_v16 = vmul.f32 %v428_v0, %v1821_v22  ;;  %v443_v27 = vmul.f32 %v426_v52, %v1833_v32 }
 0x180   : > { %479 = vrot.lane.b32.xlu0 %v1991_v14, %s1599_s17 }
 0x181   : > { %481 = vrot.lane.b32.xlu1 %v2002_v49, %s1599_s17 }
 0x184   : > { %429 = vrot.lane.b32.xlu0 %v428_v0, %s1598_s15 }
 0x185   : > { %431 = vrot.lane.b32.xlu1 %v427_v15, %s1598_s15 }
 0x188   : > { %433 = vrot.lane.b32.xlu0 %v426_v52, %s1598_s15 }
 0x189   : > { %447 = vrot.lane.b32.xlu1 %v428_v0, %s1599_s17  ;;  %v471_v0 = vmul.f32 %v1989_v44, %v1847_v42  ;;  %v473_v44 = vmul.f32 %v2002_v49, %v1860_v57 }
 0x18c   : > { %449 = vrot.lane.b32.xlu0 %v427_v15, %s1599_s17 }
 0x18d   : > { %451 = vrot.lane.b32.xlu1 %v426_v52, %s1599_s17 }
 0x190   : > { %495 = vrot.lane.b32.xlu0 %v2008_v50, %s1598_s15 }
 0x191   : > { %497 = vrot.lane.b32.xlu1 %v2022_v58, %s1598_s15 }
 0x194   : > { %499 = vrot.lane.b32.xlu0 %v2026_v59, %s1598_s15 }
 0x195   : > { %513 = vrot.lane.b32.xlu1 %v2008_v50, %s1599_s17 }
 0x198   : > { %515 = vrot.lane.b32.xlu0 %v2022_v58, %s1599_s17 }
 0x199   : > { %517 = vrot.lane.b32.xlu1 %v2026_v59, %s1599_s17 }
 0x1ea   : > { %v460_v60 = vpop.permute.xlu0 %459 }
 0x1eb   : > { %v462_v61 = vpop.permute.xlu1 %461  ;;  %v465_v46 = vmul.f32 %v460_v60, %v1845_v41 }
 0x1ee   : > { %v464_v31 = vpop.permute.xlu0 %463 }
 0x1ef   : > { %v478_v35 = vpop.permute.xlu1 %477  ;;  %v467_v60 = vmul.f32 %v464_v31, %v1858_v56  ;;  %v507_v31 = vmul.f32 %v2008_v50, %v1875_v18  ;;  %v509_v50 = vmul.f32 %v2026_v59, %v1890_v43 }
 0x1f0   : > { %v483_v52 = vmul.f32 %v478_v35, %v1865_v5 }
 0x1f2   : > { %v480_v36 = vpop.permute.xlu0 %479 }
 0x1f3   : > { %v482_v62 = vpop.permute.xlu1 %481 }
 0x1f6   : > { %v430_v63 = vpop.permute.xlu0 %429 }
 0x1f7   : > { %v432_v2 = vpop.permute.xlu1 %431  ;;  %v435_v4 = vmul.f32 %v430_v63, %v1823_v23  ;;  %v466_v63 = vmul.f32 %v462_v61, %v1839_v37  ;;  %v484_v61 = vmul.f32 %v480_v36, %v1867_v6  ;;  %v508_v36 = vmul.f32 %v2022_v58, %v1869_v10 }
 0x1f8   : > { %v436_v8 = vmul.f32 %v432_v2, %v1819_v21 }
 0x1f9   : > { %v444_v11 = vadd.f32 %v441_v16, %v435_v4 }
 0x1fa   : > { %v434_v7 = vpop.permute.xlu0 %433  ;;  %v445_v24 = vadd.f32 %v442_v25, %v436_v8  ;;  %v472_v8 = vmul.f32 %v1991_v14, %v1841_v38  ;;  %v485_v25 = vmul.f32 %v482_v62, %v1877_v20 }
 0x1fb   : > { %v448_v9 = vpop.permute.xlu1 %447  ;;  %v437_v13 = vmul.f32 %v434_v7, %v1835_v33 }
 0x1fc   : > { %v453_v12 = vmul.f32 %v448_v9, %v1826_v26 }
 0x1fd   : > { %v446_v51 = vadd.f32 %v443_v27, %v437_v13 }
 0x1fe   : > { %v456_v47 = vadd.f32 %v453_v12, %v444_v11  ;;  %v450_v48 = vpop.permute.xlu0 %449 }
 0x1ff   : > { %v452_v30 = vpop.permute.xlu1 %451  ;;  %v454_v29 = vmul.f32 %v450_v48, %v1829_v28 }
 0x200   : > { %v468_v34 = vadd.f32 %v465_v46, %v456_v47  ;;  %v455_v55 = vmul.f32 %v452_v30, %v1843_v40 }
 0x201   : > { %v457_v15 = vadd.f32 %v454_v29, %v445_v24 }
 0x202   : > { %v458_v2 = vadd.f32 %v455_v55, %v446_v51  ;;  %v474_v4 = vadd.f32 %v471_v0, %v468_v34  ;;  %v496_v16 = vpop.permute.xlu0 %495 }
 0x203   : > { %v469_v7 = vadd.f32 %v466_v63, %v457_v15  ;;  %v498_v9 = vpop.permute.xlu1 %497  ;;  %v501_v11 = vmul.f32 %v496_v16, %v1879_v3 }
 0x204   : > { %v470_v12 = vadd.f32 %v467_v60, %v458_v2  ;;  %v486_v13 = vadd.f32 %v483_v52, %v474_v4  ;;  %v502_v48 = vmul.f32 %v498_v9, %v1873_v17 }
 0x205   : > { %v475_v35 = vadd.f32 %v472_v8, %v469_v7 }
 0x206   : > { %v504_v27 = vadd.f32 %v501_v11, %v486_v13  ;;  %v500_v46 = vpop.permute.xlu0 %499  ;;  %v476_v47 = vadd.f32 %v473_v44, %v470_v12 }
 0x207   : > { %v487_v14 = vadd.f32 %v484_v61, %v475_v35  ;;  %v514_v24 = vpop.permute.xlu1 %513  ;;  %v503_v30 = vmul.f32 %v500_v46, %v1892_v45 }
 0x208   : > { %v510_v29 = vadd.f32 %v507_v31, %v504_v27  ;;  %v519_v49 = vmul.f32 %v514_v24, %v1888_v39  ;;  %v488_v34 = vadd.f32 %v485_v25, %v476_v47 }
 0x209   : > { %v505_v51 = vadd.f32 %v502_v48, %v487_v14 }
 0x20a   : > { %v2081_v62 = vadd.f32 %v519_v49, %v510_v29  ;;  %v506_v55 = vadd.f32 %v503_v30, %v488_v34  ;;  %v516_v0 = vpop.permute.xlu0 %515 }
 0x20b   : > { %v518_v63 = vpop.permute.xlu1 %517  ;;  %v511_v15 = vadd.f32 %v508_v36, %v505_v51  ;;  %v520_v52 = vmul.f32 %v516_v0, %v1900_v54 }
 0x20c   : > { %v512_v60 = vadd.f32 %v509_v50, %v506_v55  ;;  %v521_v2 = vmul.f32 %v518_v63, %v1898_v53  ;;  %561 = vrot.lane.b32.xlu0 %v2081_v62, %s1598_s15  ;;  %v525_v59 = vrot.slane %v2081_v62, 7  ;;  %v591_v7 = vrot.slane %v2081_v62, 1 }
 0x20d   : > { %v2087_v4 = vadd.f32 %v520_v52, %v511_v15 }
 0x20e   : > { %v2089_v58 = vadd.f32 %v521_v2, %v512_v60 }
 0x20f   : > { %563 = vrot.lane.b32.xlu1 %v2087_v4, %s1598_s15  ;;  %v526_v16 = vrot.slane %v2087_v4, 7  ;;  %v592_v8 = vrot.slane %v2087_v4, 1 }
 0x210   : > { %565 = vrot.lane.b32.xlu0 %v2089_v58, %s1598_s15  ;;  %v527_v9 = vrot.slane %v2089_v58, 7  ;;  %v593_v11 = vrot.slane %v2089_v58, 1 }
 0x211   : > { %v529_v12 = vsel %vm185_vm0, %v525_v59, %v526_v16  ;;  %v2105_v13 = vsel %vm275_vm1, %v591_v7, %v592_v8 }
 0x212   : > { %v530_v44 = vsel %vm185_vm0, %v527_v9, %v525_v59  ;;  %v528_v61 = vsel %vm185_vm0, %v526_v16, %v527_v9  ;;  %v2115_v35 = vsel %vm275_vm1, %v592_v8, %v593_v11  ;;  %v2119_v31 = vsel %vm275_vm1, %v593_v11, %v591_v7 }
 0x213   : > { %579 = vrot.lane.b32.xlu1 %v2081_v62, %s1599_s17  ;;  %v543_v36 = vmul.f32 %v530_v44, %v1821_v22  ;;  %v544_v51 = vmul.f32 %v529_v12, %v1817_v19  ;;  %v545_v2 = vmul.f32 %v528_v61, %v1833_v32 }
 0x214   : > { %581 = vrot.lane.b32.xlu0 %v2087_v4, %s1599_s17 }
 0x217   : > { %583 = vrot.lane.b32.xlu1 %v2089_v58, %s1599_s17 }
 0x218   : > { %531 = vrot.lane.b32.xlu0 %v530_v44, %s1598_s15 }
 0x21b   : > { %533 = vrot.lane.b32.xlu1 %v529_v12, %s1598_s15 }
 0x21c   : > { %535 = vrot.lane.b32.xlu0 %v528_v61, %s1598_s15 }
 0x21f   : > { %549 = vrot.lane.b32.xlu1 %v530_v44, %s1599_s17 }
 0x220   : > { %551 = vrot.lane.b32.xlu0 %v529_v12, %s1599_s17 }
 0x223   : > { %553 = vrot.lane.b32.xlu1 %v528_v61, %s1599_s17 }
 0x224   : > { %597 = vrot.lane.b32.xlu0 %v2105_v13, %s1598_s15 }
 0x227   : > { %599 = vrot.lane.b32.xlu1 %v2115_v35, %s1598_s15 }
 0x228   : > { %601 = vrot.lane.b32.xlu0 %v2119_v31, %s1598_s15 }
 0x22b   : > { %615 = vrot.lane.b32.xlu1 %v2105_v13, %s1599_s17 }
 0x22c   : > { %617 = vrot.lane.b32.xlu0 %v2115_v35, %s1599_s17 }
 0x22f   : > { %619 = vrot.lane.b32.xlu1 %v2119_v31, %s1599_s17 }
 0x27e   : > { %v562_v25 = vpop.permute.xlu0 %561 }
 0x27f   : > { %v567_v59 = vmul.f32 %v562_v25, %v1845_v41 }
 0x281   : > { %v564_v27 = vpop.permute.xlu1 %563 }
 0x282   : > { %v566_v46 = vpop.permute.xlu0 %565  ;;  %v568_v7 = vmul.f32 %v564_v27, %v1839_v37 }
 0x283   : > { %v569_v61 = vmul.f32 %v566_v46, %v1858_v56  ;;  %v609_v46 = vmul.f32 %v2105_v13, %v1875_v18  ;;  %v611_v13 = vmul.f32 %v2119_v31, %v1890_v43 }
 0x285   : > { %v580_v47 = vpop.permute.xlu1 %579 }
 0x286   : > { %v582_v14 = vpop.permute.xlu0 %581  ;;  %v585_v25 = vmul.f32 %v580_v47, %v1865_v5 }
 0x289   : > { %v584_v48 = vpop.permute.xlu1 %583 }
 0x28a   : > { %v532_v24 = vpop.permute.xlu0 %531  ;;  %v587_v47 = vmul.f32 %v584_v48, %v1877_v20 }
 0x28b   : > { %v537_v29 = vmul.f32 %v532_v24, %v1823_v23  ;;  %v573_v24 = vmul.f32 %v2081_v62, %v1847_v42 }
 0x28d   : > { %v534_v30 = vpop.permute.xlu1 %533  ;;  %v546_v55 = vadd.f32 %v543_v36, %v537_v29  ;;  %v586_v36 = vmul.f32 %v582_v14, %v1867_v6 }
 0x28e   : > { %v536_v49 = vpop.permute.xlu0 %535  ;;  %v538_v34 = vmul.f32 %v534_v30, %v1819_v21 }
 0x28f   : > { %v539_v0 = vmul.f32 %v536_v49, %v1835_v33  ;;  %v574_v49 = vmul.f32 %v2087_v4, %v1841_v38 }
 0x290   : > { %v547_v52 = vadd.f32 %v544_v51, %v538_v34 }
 0x291   : > { %v550_v50 = vpop.permute.xlu1 %549  ;;  %v548_v11 = vadd.f32 %v545_v2, %v539_v0  ;;  %v610_v2 = vmul.f32 %v2115_v35, %v1869_v10 }
 0x292   : > { %v555_v63 = vmul.f32 %v550_v50, %v1826_v26  ;;  %v552_v15 = vpop.permute.xlu0 %551 }
 0x293   : > { %v556_v60 = vmul.f32 %v552_v15, %v1829_v28 }
 0x294   : > { %v558_v16 = vadd.f32 %v555_v63, %v546_v55  ;;  %v575_v55 = vmul.f32 %v2089_v58, %v1860_v57 }
 0x295   : > { %v559_v8 = vadd.f32 %v556_v60, %v547_v52  ;;  %v554_v9 = vpop.permute.xlu1 %553 }
 0x296   : > { %v570_v12 = vadd.f32 %v567_v59, %v558_v16  ;;  %v557_v44 = vmul.f32 %v554_v9, %v1843_v40  ;;  %v598_v30 = vpop.permute.xlu0 %597 }
 0x297   : > { %v571_v29 = vadd.f32 %v568_v7, %v559_v8  ;;  %v603_v63 = vmul.f32 %v598_v30, %v1879_v3 }
 0x298   : > { %v560_v34 = vadd.f32 %v557_v44, %v548_v11  ;;  %v576_v27 = vadd.f32 %v573_v24, %v570_v12 }
 0x299   : > { %v600_v51 = vpop.permute.xlu1 %599  ;;  %v577_v50 = vadd.f32 %v574_v49, %v571_v29 }
 0x29a   : > { %v572_v0 = vadd.f32 %v569_v61, %v560_v34  ;;  %v588_v62 = vadd.f32 %v585_v25, %v576_v27  ;;  %v604_v15 = vmul.f32 %v600_v51, %v1873_v17  ;;  %v602_v4 = vpop.permute.xlu0 %601 }
 0x29b   : > { %v589_v52 = vadd.f32 %v586_v36, %v577_v50  ;;  %v605_v7 = vmul.f32 %v602_v4, %v1892_v45 }
 0x29c   : > { %v606_v60 = vadd.f32 %v603_v63, %v588_v62  ;;  %v578_v14 = vadd.f32 %v575_v55, %v572_v0 }
 0x29d   : > { %v607_v59 = vadd.f32 %v604_v15, %v589_v52  ;;  %v616_v58 = vpop.permute.xlu1 %615 }
 0x29e   : > { %v590_v16 = vadd.f32 %v587_v47, %v578_v14  ;;  %v612_v8 = vadd.f32 %v609_v46, %v606_v60  ;;  %v621_v9 = vmul.f32 %v616_v58, %v1888_v39  ;;  %v618_v11 = vpop.permute.xlu0 %617 }
 0x29f   : > { %v613_v12 = vadd.f32 %v610_v2, %v607_v59  ;;  %v622_v44 = vmul.f32 %v618_v11, %v1900_v54 }
 0x2a0   : > { %v608_v48 = vadd.f32 %v605_v7, %v590_v16  ;;  %v2175_v24 = vadd.f32 %v621_v9, %v612_v8 }
 0x2a1   : > { %v2177_v30 = vadd.f32 %v622_v44, %v613_v12  ;;  %v620_v35 = vpop.permute.xlu1 %619 }
 0x2a2   : > { %v614_v29 = vadd.f32 %v611_v13, %v608_v48  ;;  %v623_v49 = vmul.f32 %v620_v35, %v1898_v53  ;;  %663 = vrot.lane.b32.xlu0 %v2175_v24, %s1598_s15  ;;  %v627_v61 = vrot.slane %v2175_v24, 7  ;;  %v693_v25 = vrot.slane %v2175_v24, 1 }
 0x2a3   : > { %665 = vrot.lane.b32.xlu1 %v2177_v30, %s1598_s15  ;;  %v628_v31 = vrot.slane %v2177_v30, 7  ;;  %v694_v34 = vrot.slane %v2177_v30, 1 }
 0x2a4   : > { %v2188_v27 = vadd.f32 %v623_v49, %v614_v29 }
 0x2a5   : > { %v631_v36 = vsel %vm185_vm0, %v627_v61, %v628_v31  ;;  %v2194_v51 = vsel %vm275_vm1, %v693_v25, %v694_v34 }
 0x2a6   : > { %667 = vrot.lane.b32.xlu0 %v2188_v27, %s1598_s15  ;;  %v629_v50 = vrot.slane %v2188_v27, 7  ;;  %v695_v55 = vrot.slane %v2188_v27, 1  ;;  %v646_v13 = vmul.f32 %v631_v36, %v1817_v19 }
 0x2a7   : > { %681 = vrot.lane.b32.xlu1 %v2175_v24, %s1599_s17 }
 0x2a8   : > { %v632_v0 = vsel %vm185_vm0, %v629_v50, %v627_v61  ;;  %v630_v62 = vsel %vm185_vm0, %v628_v31, %v629_v50  ;;  %v2208_v63 = vsel %vm275_vm1, %v694_v34, %v695_v55  ;;  %v2212_v15 = vsel %vm275_vm1, %v695_v55, %v693_v25 }
 0x2a9   : > { %v645_v16 = vmul.f32 %v632_v0, %v1821_v22  ;;  %v647_v48 = vmul.f32 %v630_v62, %v1833_v32 }
 0x2aa   : > { %683 = vrot.lane.b32.xlu0 %v2177_v30, %s1599_s17 }
 0x2ab   : > { %685 = vrot.lane.b32.xlu1 %v2188_v27, %s1599_s17 }
 0x2ae   : > { %633 = vrot.lane.b32.xlu0 %v632_v0, %s1598_s15 }
 0x2af   : > { %635 = vrot.lane.b32.xlu1 %v631_v36, %s1598_s15 }
 0x2b2   : > { %637 = vrot.lane.b32.xlu0 %v630_v62, %s1598_s15 }
 0x2b3   : > { %651 = vrot.lane.b32.xlu1 %v632_v0, %s1599_s17 }
 0x2b6   : > { %653 = vrot.lane.b32.xlu0 %v631_v36, %s1599_s17 }
 0x2b7   : > { %655 = vrot.lane.b32.xlu1 %v630_v62, %s1599_s17 }
 0x2ba   : > { %699 = vrot.lane.b32.xlu0 %v2194_v51, %s1598_s15 }
 0x2bb   : > { %701 = vrot.lane.b32.xlu1 %v2208_v63, %s1598_s15 }
 0x2be   : > { %703 = vrot.lane.b32.xlu0 %v2212_v15, %s1598_s15 }
 0x2bf   : > { %717 = vrot.lane.b32.xlu1 %v2194_v51, %s1599_s17 }
 0x2c2   : > { %719 = vrot.lane.b32.xlu0 %v2208_v63, %s1599_s17 }
 0x2c3   : > { %721 = vrot.lane.b32.xlu1 %v2212_v15, %s1599_s17 }
 0x314   : > { %v664_v4 = vpop.permute.xlu0 %663 }
 0x315   : > { %v666_v52 = vpop.permute.xlu1 %665  ;;  %v669_v35 = vmul.f32 %v664_v4, %v1845_v41 }
 0x318   : > { %v668_v46 = vpop.permute.xlu0 %667 }
 0x319   : > { %v682_v47 = vpop.permute.xlu1 %681  ;;  %v671_v41 = vmul.f32 %v668_v46, %v1858_v56  ;;  %v711_v56 = vmul.f32 %v2194_v51, %v1875_v18  ;;  %v713_v51 = vmul.f32 %v2212_v15, %v1890_v43 }
 0x31a   : > { %v687_v32 = vmul.f32 %v682_v47, %v1865_v5 }
 0x31c   : > { %v684_v60 = vpop.permute.xlu0 %683 }
 0x31d   : > { %v686_v14 = vpop.permute.xlu1 %685 }
 0x320   : > { %v634_v2 = vpop.permute.xlu0 %633 }
 0x321   : > { %v636_v59 = vpop.permute.xlu1 %635  ;;  %v639_v58 = vmul.f32 %v634_v2, %v1823_v23 }
 0x322   : > { %v640_v8 = vmul.f32 %v636_v59, %v1819_v21 }
 0x323   : > { %v648_v11 = vadd.f32 %v645_v16, %v639_v58 }
 0x324   : > { %v638_v7 = vpop.permute.xlu0 %637  ;;  %v649_v23 = vadd.f32 %v646_v13, %v640_v8 }
 0x325   : > { %v652_v9 = vpop.permute.xlu1 %651  ;;  %v641_v44 = vmul.f32 %v638_v7, %v1835_v33  ;;  %v670_v33 = vmul.f32 %v666_v52, %v1839_v37  ;;  %v677_v37 = vmul.f32 %v2188_v27, %v1860_v57  ;;  %v689_v52 = vmul.f32 %v686_v14, %v1877_v20 }
 0x326   : > { %v657_v12 = vmul.f32 %v652_v9, %v1826_v26  ;;  %v675_v26 = vmul.f32 %v2175_v24, %v1847_v42  ;;  %v688_v42 = vmul.f32 %v684_v60, %v1867_v6  ;;  %v712_v60 = vmul.f32 %v2208_v63, %v1869_v10 }
 0x327   : > { %v650_v21 = vadd.f32 %v647_v48, %v641_v44 }
 0x328   : > { %v660_v29 = vadd.f32 %v657_v12, %v648_v11  ;;  %v654_v49 = vpop.permute.xlu0 %653 }
 0x329   : > { %v656_v61 = vpop.permute.xlu1 %655  ;;  %v658_v22 = vmul.f32 %v654_v49, %v1829_v28  ;;  %v676_v28 = vmul.f32 %v2177_v30, %v1841_v38 }
 0x32a   : > { %v672_v25 = vadd.f32 %v669_v35, %v660_v29  ;;  %v659_v31 = vmul.f32 %v656_v61, %v1843_v40 }
 0x32b   : > { %v661_v19 = vadd.f32 %v658_v22, %v649_v23 }
 0x32c   : > { %v662_v34 = vadd.f32 %v659_v31, %v650_v21  ;;  %v678_v36 = vadd.f32 %v675_v26, %v672_v25  ;;  %v700_v50 = vpop.permute.xlu0 %699 }
 0x32d   : > { %v673_v55 = vadd.f32 %v670_v33, %v661_v19  ;;  %v702_v0 = vpop.permute.xlu1 %701  ;;  %v705_v40 = vmul.f32 %v700_v50, %v1879_v3 }
 0x32e   : > { %v674_v62 = vadd.f32 %v671_v41, %v662_v34  ;;  %v690_v4 = vadd.f32 %v687_v32, %v678_v36  ;;  %v706_v30 = vmul.f32 %v702_v0, %v1873_v17  ;;  %v2329_v0 = vld [vmem:[#allocation5] sm:$0xff] }
 0x32f   : > { %v679_v24 = vadd.f32 %v676_v28, %v673_v55 }
 0x330   : > { %v708_v46 = vadd.f32 %v705_v40, %v690_v4  ;;  %v704_v47 = vpop.permute.xlu0 %703  ;;  %v680_v2 = vadd.f32 %v677_v37, %v674_v62  ;;  %v2332_v4 = vld [vmem:[#allocation5 + $0x8] sm:$0xff] }
 0x331   : > { %v691_v38 = vadd.f32 %v688_v42, %v679_v24  ;;  %v718_v59 = vpop.permute.xlu1 %717  ;;  %v707_v58 = vmul.f32 %v704_v47, %v1892_v45  ;;  %v2335_v42 = vld [vmem:[#allocation5 + $0x18] sm:$0xff] }
 0x332   : > { %v714_v16 = vadd.f32 %v711_v56, %v708_v46  ;;  %v723_v57 = vmul.f32 %v718_v59, %v1888_v39  ;;  %v692_v27 = vadd.f32 %v689_v52, %v680_v2  ;;  %v2338_v56 = vld [vmem:[#allocation5 + $0x20] sm:$0xff]  ;;  %v2341_v2 = vld [vmem:[#allocation5 + $0x10] sm:$0xff] }
 0x333   : > { %v709_v7 = vadd.f32 %v706_v30, %v691_v38  ;;  %v2344_v30 = vld [vmem:[#allocation5 + $0x30] sm:$0xff] }
 0x334   : > { %v2267_v14 = vadd.f32 %v723_v57, %v714_v16  ;;  %v710_v8 = vadd.f32 %v707_v58, %v692_v27  ;;  %v720_v9 = vpop.permute.xlu0 %719  ;;  %v2347_v57 = vld [vmem:[#allocation5 + $0x38] sm:$0xff] }
 0x335   : > { %v722_v11 = vpop.permute.xlu1 %721  ;;  %v715_v12 = vadd.f32 %v712_v60, %v709_v7  ;;  %v724_v44 = vmul.f32 %v720_v9, %v1900_v54  ;;  %v2350_v60 = vld [vmem:[#allocation5 + $0x48] sm:$0xff] }
 0x336   : > { %v716_v13 = vadd.f32 %v713_v51, %v710_v8  ;;  %v725_v48 = vmul.f32 %v722_v11, %v1898_v53  ;;  %765 = vrot.lane.b32.xlu0 %v2267_v14, %s1598_s15  ;;  %v729_v63 = vrot.slane %v2267_v14, 7  ;;  %v795_v29 = vrot.slane %v2267_v14, 1  ;;  %v2353_v51 = vld [vmem:[#allocation5 + $0x28] sm:$0xff]  ;;  %v2356_v11 = vld [vmem:[#allocation5 + $0x50] sm:$0xff] }
 0x337   : > { %v2273_v35 = vadd.f32 %v724_v44, %v715_v12 }
 0x338   : > { %v2275_v10 = vadd.f32 %v725_v48, %v716_v13 }
 0x339   : > { %767 = vrot.lane.b32.xlu1 %v2273_v35, %s1598_s15  ;;  %v730_v15 = vrot.slane %v2273_v35, 7  ;;  %v796_v49 = vrot.slane %v2273_v35, 1 }
 0x33a   : > { %769 = vrot.lane.b32.xlu0 %v2275_v10, %s1598_s15  ;;  %v731_v23 = vrot.slane %v2275_v10, 7  ;;  %v797_v61 = vrot.slane %v2275_v10, 1 }
 0x33b   : > { %v733_v22 = vsel %vm185_vm0, %v729_v63, %v730_v15  ;;  %v2291_v25 = vsel %vm275_vm1, %v795_v29, %v796_v49 }
 0x33c   : > { %v734_v21 = vsel %vm185_vm0, %v731_v23, %v729_v63  ;;  %v732_v31 = vsel %vm185_vm0, %v730_v15, %v731_v23  ;;  %v2301_v26 = vsel %vm275_vm1, %v796_v49, %v797_v61  ;;  %v2305_v33 = vsel %vm275_vm1, %v797_v61, %v795_v29  ;;  %v2359_v15 = vld [vmem:[#allocation5 + $0x40] sm:$0xff] }
 0x33d   : > { %783 = vrot.lane.b32.xlu1 %v2267_v14, %s1599_s17  ;;  %v747_v24 = vmul.f32 %v2335_v42, %v734_v21  ;;  %v748_v52 = vmul.f32 %v2338_v56, %v733_v22  ;;  %v749_v8 = vmul.f32 %v2353_v51, %v732_v31  ;;  %v2362_v49 = vld [vmem:[#allocation5 + $0x60] sm:$0xff] }
 0x33e   : > { %785 = vrot.lane.b32.xlu0 %v2273_v35, %s1599_s17  ;;  %v777_v23 = vmul.f32 %v2362_v49, %v2267_v14  ;;  %v2375_v14 = vld [vmem:[#allocation5 + $0x70] sm:$0xff] }
 0x341   : > { %787 = vrot.lane.b32.xlu1 %v2275_v10, %s1599_s17 }
 0x342   : > { %735 = vrot.lane.b32.xlu0 %v734_v21, %s1598_s15 }
 0x345   : > { %737 = vrot.lane.b32.xlu1 %v733_v22, %s1598_s15 }
 0x346   : > { %739 = vrot.lane.b32.xlu0 %v732_v31, %s1598_s15 }
 0x349   : > { %753 = vrot.lane.b32.xlu1 %v734_v21, %s1599_s17  ;;  %v2366_v21 = vld [vmem:[#allocation5 + $0x68] sm:$0xff] }
 0x34a   : > { %755 = vrot.lane.b32.xlu0 %v733_v22, %s1599_s17 }
 0x34d   : > { %757 = vrot.lane.b32.xlu1 %v732_v31, %s1599_s17  ;;  %v778_v31 = vmul.f32 %v2366_v21, %v2273_v35 }
 0x34e   : > { %801 = vrot.lane.b32.xlu0 %v2291_v25, %s1598_s15 }
 0x351   : > { %803 = vrot.lane.b32.xlu1 %v2301_v26, %s1598_s15 }
 0x352   : > { %805 = vrot.lane.b32.xlu0 %v2305_v33, %s1598_s15 }
 0x355   : > { %819 = vrot.lane.b32.xlu1 %v2291_v25, %s1599_s17 }
 0x356   : > { %821 = vrot.lane.b32.xlu0 %v2301_v26, %s1599_s17 }
 0x359   : > { %823 = vrot.lane.b32.xlu1 %v2305_v33, %s1599_s17 }
 0x3a8   : > { %v766_v19 = vpop.permute.xlu0 %765 }
 0x3a9   : > { %v771_v7 = vmul.f32 %v2350_v60, %v766_v19  ;;  %v2370_v19 = vld [vmem:[#allocation5 + $0x58] sm:$0xff] }
 0x3ab   : > { %v768_v32 = vpop.permute.xlu1 %767 }
 0x3ac   : > { %v770_v41 = vpop.permute.xlu0 %769  ;;  %v772_v12 = vmul.f32 %v2356_v11, %v768_v32 }
 0x3ad   : > { %v773_v32 = vmul.f32 %v2370_v19, %v770_v41 }
 0x3af   : > { %v784_v34 = vpop.permute.xlu1 %783 }
 0x3b0   : > { %v786_v36 = vpop.permute.xlu0 %785 }
 0x3b3   : > { %v788_v50 = vpop.permute.xlu1 %787 }
 0x3b4   : > { %v736_v55 = vpop.permute.xlu0 %735 }
 0x3b5   : > { %v741_v40 = vmul.f32 %v2329_v0, %v736_v55  ;;  %v789_v55 = vmul.f32 %v784_v34, %v1865_v5  ;;  %v813_v5 = vmul.f32 %v2291_v25, %v1875_v18 }
 0x3b7   : > { %v738_v28 = vpop.permute.xlu1 %737  ;;  %v750_v47 = vadd.f32 %v747_v24, %v741_v40 }
 0x3b8   : > { %v740_v62 = vpop.permute.xlu0 %739  ;;  %v742_v37 = vmul.f32 %v2332_v4, %v738_v28 }
 0x3b9   : > { %v743_v38 = vmul.f32 %v2341_v2, %v740_v62  ;;  %v790_v62 = vmul.f32 %v786_v36, %v1867_v6  ;;  %v791_v6 = vmul.f32 %v788_v50, %v1877_v20  ;;  %v815_v20 = vmul.f32 %v2305_v33, %v1890_v43 }
 0x3ba   : > { %v751_v16 = vadd.f32 %v748_v52, %v742_v37  ;;  %v779_v52 = vmul.f32 %v2375_v14, %v2275_v10 }
 0x3bb   : > { %v754_v46 = vpop.permute.xlu1 %753  ;;  %v752_v48 = vadd.f32 %v749_v8, %v743_v38 }
 0x3bc   : > { %v759_v59 = vmul.f32 %v2344_v30, %v754_v46  ;;  %v756_v58 = vpop.permute.xlu0 %755 }
 0x3bd   : > { %v760_v27 = vmul.f32 %v2347_v57, %v756_v58  ;;  %v2384_v58 = vld [vmem:[#allocation5 + $0xb0] sm:$0xff] }
 0x3be   : > { %v762_v9 = vadd.f32 %v759_v59, %v750_v47  ;;  %v814_v10 = vmul.f32 %v2384_v58, %v2301_v26 }
 0x3bf   : > { %v763_v44 = vadd.f32 %v760_v27, %v751_v16  ;;  %v758_v13 = vpop.permute.xlu1 %757 }
 0x3c0   : > { %v774_v63 = vadd.f32 %v771_v7, %v762_v9  ;;  %v761_v29 = vmul.f32 %v2359_v15, %v758_v13  ;;  %v802_v61 = vpop.permute.xlu0 %801 }
 0x3c1   : > { %v775_v22 = vadd.f32 %v772_v12, %v763_v44  ;;  %v807_v35 = vmul.f32 %v802_v61, %v1879_v3 }
 0x3c2   : > { %v764_v28 = vadd.f32 %v761_v29, %v752_v48  ;;  %v780_v40 = vadd.f32 %v777_v23, %v774_v63 }
 0x3c3   : > { %v804_v37 = vpop.permute.xlu1 %803  ;;  %v781_v24 = vadd.f32 %v778_v31, %v775_v22 }
 0x3c4   : > { %v776_v46 = vadd.f32 %v773_v32, %v764_v28  ;;  %v792_v47 = vadd.f32 %v789_v55, %v780_v40  ;;  %v808_v38 = vmul.f32 %v804_v37, %v1873_v17  ;;  %v806_v41 = vpop.permute.xlu0 %805 }
 0x3c5   : > { %v793_v59 = vadd.f32 %v790_v62, %v781_v24  ;;  %v809_v3 = vmul.f32 %v806_v41, %v1892_v45 }
 0x3c6   : > { %v810_v34 = vadd.f32 %v807_v35, %v792_v47  ;;  %v782_v36 = vadd.f32 %v779_v52, %v776_v46 }
 0x3c7   : > { %v811_v16 = vadd.f32 %v808_v38, %v793_v59  ;;  %v820_v27 = vpop.permute.xlu1 %819 }
 0x3c8   : > { %v794_v7 = vadd.f32 %v791_v6, %v782_v36  ;;  %v816_v17 = vadd.f32 %v813_v5, %v810_v34  ;;  %v825_v8 = vmul.f32 %v820_v27, %v1888_v39  ;;  %v822_v9 = vpop.permute.xlu0 %821 }
 0x3c9   : > { %v817_v12 = vadd.f32 %v814_v10, %v811_v16  ;;  %v826_v18 = vmul.f32 %v822_v9, %v1900_v54 }
 0x3ca   : > { %v812_v25 = vadd.f32 %v809_v3, %v794_v7  ;;  %v2393_v50 = vadd.f32 %v825_v8, %v816_v17 }
 0x3cb   : > { %v2395_v44 = vadd.f32 %v826_v18, %v817_v12  ;;  %v824_v26 = vpop.permute.xlu1 %823 }
 0x3cc   : > { %v818_v13 = vadd.f32 %v815_v20, %v812_v25  ;;  %v827_v48 = vmul.f32 %v824_v26, %v1898_v53  ;;  %867 = vrot.lane.b32.xlu0 %v2393_v50, %s1598_s15  ;;  %v831_v39 = vrot.slane %v2393_v50, 7  ;;  %v897_v45 = vrot.slane %v2393_v50, 1 }
 0x3cd   : > { %869 = vrot.lane.b32.xlu1 %v2395_v44, %s1598_s15  ;;  %v832_v43 = vrot.slane %v2395_v44, 7  ;;  %v898_v54 = vrot.slane %v2395_v44, 1  ;;  %v879_v20 = vmul.f32 %v2362_v49, %v2393_v50 }
 0x3ce   : > { %v2406_v33 = vadd.f32 %v827_v48, %v818_v13  ;;  %v2467_v13 = vld [vmem:[#allocation5 + $0x78] sm:$0xff] }
 0x3cf   : > { %v835_v63 = vsel %vm185_vm0, %v831_v39, %v832_v43  ;;  %v2412_v53 = vsel %vm275_vm1, %v897_v45, %v898_v54 }
 0x3d0   : > { %871 = vrot.lane.b32.xlu0 %v2406_v33, %s1598_s15  ;;  %v833_v29 = vrot.slane %v2406_v33, 7  ;;  %v899_v23 = vrot.slane %v2406_v33, 1  ;;  %v850_v36 = vmul.f32 %v2338_v56, %v835_v63 }
 0x3d1   : > { %885 = vrot.lane.b32.xlu1 %v2393_v50, %s1599_s17 }
 0x3d2   : > { %v836_v61 = vsel %vm185_vm0, %v833_v29, %v831_v39  ;;  %v834_v22 = vsel %vm185_vm0, %v832_v43, %v833_v29  ;;  %v2426_v31 = vsel %vm275_vm1, %v898_v54, %v899_v23  ;;  %v2430_v32 = vsel %vm275_vm1, %v899_v23, %v897_v45 }
 0x3d3   : > { %v849_v35 = vmul.f32 %v2335_v42, %v836_v61  ;;  %v851_v27 = vmul.f32 %v2353_v51, %v834_v22  ;;  %v880_v29 = vmul.f32 %v2366_v21, %v2395_v44 }
 0x3d4   : > { %887 = vrot.lane.b32.xlu0 %v2395_v44, %s1599_s17 }
 0x3d5   : > { %889 = vrot.lane.b32.xlu1 %v2406_v33, %s1599_s17 }
 0x3d8   : > { %837 = vrot.lane.b32.xlu0 %v836_v61, %s1598_s15 }
 0x3d9   : > { %839 = vrot.lane.b32.xlu1 %v835_v63, %s1598_s15 }
 0x3dc   : > { %841 = vrot.lane.b32.xlu0 %v834_v22, %s1598_s15 }
 0x3dd   : > { %855 = vrot.lane.b32.xlu1 %v836_v61, %s1599_s17  ;;  %v2473_v61 = vld [vmem:[#allocation5 + $0x90] sm:$0xff] }
 0x3e0   : > { %857 = vrot.lane.b32.xlu0 %v835_v63, %s1599_s17 }
 0x3e1   : > { %859 = vrot.lane.b32.xlu1 %v834_v22, %s1599_s17 }
 0x3e4   : > { %903 = vrot.lane.b32.xlu0 %v2412_v53, %s1598_s15 }
 0x3e5   : > { %905 = vrot.lane.b32.xlu1 %v2426_v31, %s1598_s15 }
 0x3e8   : > { %907 = vrot.lane.b32.xlu0 %v2430_v32, %s1598_s15 }
 0x3e9   : > { %921 = vrot.lane.b32.xlu1 %v2412_v53, %s1599_s17 }
 0x3ec   : > { %923 = vrot.lane.b32.xlu0 %v2426_v31, %s1599_s17 }
 0x3ed   : > { %925 = vrot.lane.b32.xlu1 %v2430_v32, %s1599_s17 }
 0x43e   : > { %v868_v55 = vpop.permute.xlu0 %867 }
 0x43f   : > { %v870_v28 = vpop.permute.xlu1 %869  ;;  %v873_v10 = vmul.f32 %v2350_v60, %v868_v55 }
 0x440   : > { %v874_v25 = vmul.f32 %v2356_v11, %v870_v28  ;;  %v881_v28 = vmul.f32 %v2375_v14, %v2406_v33 }
 0x442   : > { %v872_v40 = vpop.permute.xlu0 %871 }
 0x443   : > { %v886_v62 = vpop.permute.xlu1 %885  ;;  %v875_v39 = vmul.f32 %v2370_v19, %v872_v40 }
 0x444   : > { %v891_v48 = vmul.f32 %v2467_v13, %v886_v62  ;;  %v2478_v62 = vld [vmem:[#allocation5 + $0x80] sm:$0xff] }
 0x446   : > { %v888_v37 = vpop.permute.xlu0 %887 }
 0x447   : > { %v890_v24 = vpop.permute.xlu1 %889  ;;  %v892_v40 = vmul.f32 %v2478_v62, %v888_v37  ;;  %v2491_v37 = vld [vmem:[#allocation5 + $0xa0] sm:$0xff] }
 0x44a   : > { %v838_v52 = vpop.permute.xlu0 %837 }
 0x44b   : > { %v840_v46 = vpop.permute.xlu1 %839  ;;  %v843_v47 = vmul.f32 %v2329_v0, %v838_v52 }
 0x44c   : > { %v844_v41 = vmul.f32 %v2332_v4, %v840_v46  ;;  %v2481_v46 = vld [vmem:[#allocation5 + $0xa8] sm:$0xff] }
 0x44d   : > { %v852_v5 = vadd.f32 %v849_v35, %v843_v47  ;;  %v915_v44 = vmul.f32 %v2481_v46, %v2412_v53  ;;  %v2485_v47 = vld [vmem:[#allocation5 + $0x88] sm:$0xff] }
 0x44e   : > { %v842_v38 = vpop.permute.xlu0 %841  ;;  %v853_v3 = vadd.f32 %v850_v36, %v844_v41  ;;  %v893_v35 = vmul.f32 %v2485_v47, %v890_v24  ;;  %v916_v24 = vmul.f32 %v2384_v58, %v2426_v31 }
 0x44f   : > { %v856_v59 = vpop.permute.xlu1 %855  ;;  %v845_v34 = vmul.f32 %v2341_v2, %v842_v38 }
 0x450   : > { %v861_v6 = vmul.f32 %v2344_v30, %v856_v59 }
 0x451   : > { %v854_v12 = vadd.f32 %v851_v27, %v845_v34 }
 0x452   : > { %v864_v16 = vadd.f32 %v861_v6, %v852_v5  ;;  %v858_v7 = vpop.permute.xlu0 %857  ;;  %v2488_v6 = vld [vmem:[#allocation5 + $0x98] sm:$0xff] }
 0x453   : > { %v860_v17 = vpop.permute.xlu1 %859  ;;  %v862_v8 = vmul.f32 %v2347_v57, %v858_v7 }
 0x454   : > { %v876_v9 = vadd.f32 %v873_v10, %v864_v16  ;;  %v863_v18 = vmul.f32 %v2359_v15, %v860_v17  ;;  %v2494_v16 = vld [vmem:[#allocation5 + $0xc0] sm:$0xff] }
 0x455   : > { %v865_v26 = vadd.f32 %v862_v8, %v853_v3  ;;  %v2499_v3 = vld [vmem:[#allocation5 + $0xb8] sm:$0xff] }
 0x456   : > { %v866_v45 = vadd.f32 %v863_v18, %v854_v12  ;;  %v882_v43 = vadd.f32 %v879_v20, %v876_v9  ;;  %v904_v54 = vpop.permute.xlu0 %903  ;;  %v917_v17 = vmul.f32 %v2499_v3, %v2430_v32 }
 0x457   : > { %v877_v63 = vadd.f32 %v874_v25, %v865_v26  ;;  %v906_v23 = vpop.permute.xlu1 %905  ;;  %v909_v50 = vmul.f32 %v2473_v61, %v904_v54  ;;  %v2505_v25 = vld [vmem:[#allocation5 + $0xc8] sm:$0xff] }
 0x458   : > { %v878_v22 = vadd.f32 %v875_v39, %v866_v45  ;;  %v894_v55 = vadd.f32 %v891_v48, %v882_v43  ;;  %v910_v33 = vmul.f32 %v2488_v6, %v906_v23  ;;  %v2508_v39 = vld [vmem:[#allocation5 + $0xd0] sm:$0xff] }
 0x459   : > { %v883_v52 = vadd.f32 %v880_v29, %v877_v63 }
 0x45a   : > { %v912_v38 = vadd.f32 %v909_v50, %v894_v55  ;;  %v908_v41 = vpop.permute.xlu0 %907  ;;  %v884_v59 = vadd.f32 %v881_v28, %v878_v22 }
 0x45b   : > { %v895_v5 = vadd.f32 %v892_v40, %v883_v52  ;;  %v922_v34 = vpop.permute.xlu1 %921  ;;  %v911_v36 = vmul.f32 %v2491_v37, %v908_v41 }
 0x45c   : > { %v918_v10 = vadd.f32 %v915_v44, %v912_v38  ;;  %v927_v53 = vmul.f32 %v2494_v16, %v922_v34  ;;  %v896_v27 = vadd.f32 %v893_v35, %v884_v59 }
 0x45d   : > { %v913_v7 = vadd.f32 %v910_v33, %v895_v5 }
 0x45e   : > { %v2503_v8 = vadd.f32 %v927_v53, %v918_v10  ;;  %v914_v9 = vadd.f32 %v911_v36, %v896_v27  ;;  %v924_v12 = vpop.permute.xlu0 %923 }
 0x45f   : > { %v926_v18 = vpop.permute.xlu1 %925  ;;  %v919_v20 = vadd.f32 %v916_v24, %v913_v7  ;;  %v928_v26 = vmul.f32 %v2505_v25, %v924_v12 }
 0x460   : > { %v920_v48 = vadd.f32 %v917_v17, %v914_v9  ;;  %v929_v31 = vmul.f32 %v2508_v39, %v926_v18  ;;  %969 = vrot.lane.b32.xlu0 %v2503_v8, %s1598_s15  ;;  %v933_v43 = vrot.slane %v2503_v8, 7  ;;  %v999_v63 = vrot.slane %v2503_v8, 1 }
 0x461   : > { %v2513_v45 = vadd.f32 %v928_v26, %v919_v20 }
 0x462   : > { %v2515_v32 = vadd.f32 %v929_v31, %v920_v48 }
 0x463   : > { %971 = vrot.lane.b32.xlu1 %v2513_v45, %s1598_s15  ;;  %v934_v54 = vrot.slane %v2513_v45, 7  ;;  %v1000_v29 = vrot.slane %v2513_v45, 1 }
 0x464   : > { %973 = vrot.lane.b32.xlu0 %v2515_v32, %s1598_s15  ;;  %v935_v23 = vrot.slane %v2515_v32, 7  ;;  %v1001_v50 = vrot.slane %v2515_v32, 1 }
 0x465   : > { %v937_v22 = vsel %vm185_vm0, %v933_v43, %v934_v54  ;;  %v2531_v55 = vsel %vm275_vm1, %v999_v63, %v1000_v29 }
 0x466   : > { %v938_v28 = vsel %vm185_vm0, %v935_v23, %v933_v43  ;;  %v936_v40 = vsel %vm185_vm0, %v934_v54, %v935_v23  ;;  %v2539_v52 = vsel %vm275_vm1, %v1000_v29, %v1001_v50  ;;  %v2545_v44 = vsel %vm275_vm1, %v1001_v50, %v999_v63 }
 0x467   : > { %987 = vrot.lane.b32.xlu1 %v2503_v8, %s1599_s17  ;;  %v951_v24 = vmul.f32 %v2335_v42, %v938_v28  ;;  %v952_v7 = vmul.f32 %v2338_v56, %v937_v22  ;;  %v953_v43 = vmul.f32 %v2353_v51, %v936_v40 }
 0x468   : > { %989 = vrot.lane.b32.xlu0 %v2513_v45, %s1599_s17 }
 0x46b   : > { %991 = vrot.lane.b32.xlu1 %v2515_v32, %s1599_s17 }
 0x46c   : > { %939 = vrot.lane.b32.xlu0 %v938_v28, %s1598_s15 }
 0x46f   : > { %941 = vrot.lane.b32.xlu1 %v937_v22, %s1598_s15 }
 0x470   : > { %943 = vrot.lane.b32.xlu0 %v936_v40, %s1598_s15 }
 0x473   : > { %957 = vrot.lane.b32.xlu1 %v938_v28, %s1599_s17 }
 0x474   : > { %959 = vrot.lane.b32.xlu0 %v937_v22, %s1599_s17 }
 0x477   : > { %961 = vrot.lane.b32.xlu1 %v936_v40, %s1599_s17 }
 0x478   : > { %1005 = vrot.lane.b32.xlu0 %v2531_v55, %s1598_s15 }
 0x47b   : > { %1007 = vrot.lane.b32.xlu1 %v2539_v52, %s1598_s15 }
 0x47c   : > { %1009 = vrot.lane.b32.xlu0 %v2545_v44, %s1598_s15 }
 0x47f   : > { %1023 = vrot.lane.b32.xlu1 %v2531_v55, %s1599_s17 }
 0x480   : > { %1025 = vrot.lane.b32.xlu0 %v2539_v52, %s1599_s17 }
 0x483   : > { %1027 = vrot.lane.b32.xlu1 %v2545_v44, %s1599_s17 }
 0x4d2   : > { %v970_v35 = vpop.permute.xlu0 %969 }
 0x4d3   : > { %v975_v31 = vmul.f32 %v2350_v60, %v970_v35 }
 0x4d5   : > { %v972_v38 = vpop.permute.xlu1 %971 }
 0x4d6   : > { %v974_v41 = vpop.permute.xlu0 %973  ;;  %v976_v63 = vmul.f32 %v2356_v11, %v972_v38 }
 0x4d7   : > { %v977_v35 = vmul.f32 %v2370_v19, %v974_v41  ;;  %v1017_v41 = vmul.f32 %v2481_v46, %v2531_v55  ;;  %v1019_v55 = vmul.f32 %v2499_v3, %v2545_v44 }
 0x4d9   : > { %v988_v59 = vpop.permute.xlu1 %987 }
 0x4da   : > { %v990_v5 = vpop.permute.xlu0 %989  ;;  %v993_v40 = vmul.f32 %v2467_v13, %v988_v59 }
 0x4dd   : > { %v992_v33 = vpop.permute.xlu1 %991 }
 0x4de   : > { %v940_v34 = vpop.permute.xlu0 %939  ;;  %v995_v59 = vmul.f32 %v2485_v47, %v992_v33 }
 0x4df   : > { %v945_v10 = vmul.f32 %v2329_v0, %v940_v34  ;;  %v981_v34 = vmul.f32 %v2362_v49, %v2503_v8 }
 0x4e1   : > { %v942_v36 = vpop.permute.xlu1 %941  ;;  %v954_v9 = vadd.f32 %v951_v24, %v945_v10  ;;  %v994_v24 = vmul.f32 %v2478_v62, %v990_v5 }
 0x4e2   : > { %v944_v53 = vpop.permute.xlu0 %943  ;;  %v946_v27 = vmul.f32 %v2332_v4, %v942_v36 }
 0x4e3   : > { %v947_v12 = vmul.f32 %v2341_v2, %v944_v53  ;;  %v982_v53 = vmul.f32 %v2366_v21, %v2513_v45 }
 0x4e4   : > { %v955_v26 = vadd.f32 %v952_v7, %v946_v27 }
 0x4e5   : > { %v958_v17 = vpop.permute.xlu1 %957  ;;  %v956_v50 = vadd.f32 %v953_v43, %v947_v12 }
 0x4e6   : > { %v963_v18 = vmul.f32 %v2344_v30, %v958_v17  ;;  %v960_v20 = vpop.permute.xlu0 %959 }
 0x4e7   : > { %v964_v48 = vmul.f32 %v2347_v57, %v960_v20 }
 0x4e8   : > { %v966_v54 = vadd.f32 %v963_v18, %v954_v9  ;;  %v983_v9 = vmul.f32 %v2375_v14, %v2515_v32 }
 0x4e9   : > { %v967_v29 = vadd.f32 %v964_v48, %v955_v26  ;;  %v962_v23 = vpop.permute.xlu1 %961 }
 0x4ea   : > { %v978_v22 = vadd.f32 %v975_v31, %v966_v54  ;;  %v965_v28 = vmul.f32 %v2359_v15, %v962_v23  ;;  %v1006_v36 = vpop.permute.xlu0 %1005  ;;  %v1018_v31 = vmul.f32 %v2384_v58, %v2539_v52 }
 0x4eb   : > { %v979_v10 = vadd.f32 %v976_v63, %v967_v29  ;;  %v1011_v18 = vmul.f32 %v2473_v61, %v1006_v36 }
 0x4ec   : > { %v968_v27 = vadd.f32 %v965_v28, %v956_v50  ;;  %v984_v38 = vadd.f32 %v981_v34, %v978_v22 }
 0x4ed   : > { %v1008_v7 = vpop.permute.xlu1 %1007  ;;  %v985_v17 = vadd.f32 %v982_v53, %v979_v10 }
 0x4ee   : > { %v980_v12 = vadd.f32 %v977_v35, %v968_v27  ;;  %v996_v8 = vadd.f32 %v993_v40, %v984_v38  ;;  %v1012_v20 = vmul.f32 %v2488_v6, %v1008_v7  ;;  %v1010_v45 = vpop.permute.xlu0 %1009 }
 0x4ef   : > { %v997_v26 = vadd.f32 %v994_v24, %v985_v17  ;;  %v1013_v63 = vmul.f32 %v2491_v37, %v1010_v45 }
 0x4f0   : > { %v1014_v48 = vadd.f32 %v1011_v18, %v996_v8  ;;  %v986_v5 = vadd.f32 %v983_v9, %v980_v12 }
 0x4f1   : > { %v1015_v43 = vadd.f32 %v1012_v20, %v997_v26  ;;  %v1024_v32 = vpop.permute.xlu1 %1023 }
 0x4f2   : > { %v998_v54 = vadd.f32 %v995_v59, %v986_v5  ;;  %v1020_v29 = vadd.f32 %v1017_v41, %v1014_v48  ;;  %v1029_v23 = vmul.f32 %v2494_v16, %v1024_v32  ;;  %v1026_v50 = vpop.permute.xlu0 %1025 }
 0x4f3   : > { %v1021_v22 = vadd.f32 %v1018_v31, %v1015_v43  ;;  %v1030_v28 = vmul.f32 %v2505_v25, %v1026_v50 }
 0x4f4   : > { %v1016_v33 = vadd.f32 %v1013_v63, %v998_v54  ;;  %v2601_v34 = vadd.f32 %v1029_v23, %v1020_v29 }
 0x4f5   : > { %v2603_v36 = vadd.f32 %v1030_v28, %v1021_v22  ;;  %v1028_v52 = vpop.permute.xlu1 %1027 }
 0x4f6   : > { %v1022_v10 = vadd.f32 %v1019_v55, %v1016_v33  ;;  %v1031_v53 = vmul.f32 %v2508_v39, %v1028_v52  ;;  %1071 = vrot.lane.b32.xlu0 %v2601_v34, %s1598_s15  ;;  %v1035_v35 = vrot.slane %v2601_v34, 7  ;;  %v1101_v40 = vrot.slane %v2601_v34, 1 }
 0x4f7   : > { %1073 = vrot.lane.b32.xlu1 %v2603_v36, %s1598_s15  ;;  %v1036_v44 = vrot.slane %v2603_v36, 7  ;;  %v1102_v27 = vrot.slane %v2603_v36, 1 }
 0x4f8   : > { %v2614_v38 = vadd.f32 %v1031_v53, %v1022_v10 }
 0x4f9   : > { %v1039_v24 = vsel %vm185_vm0, %v1035_v35, %v1036_v44  ;;  %v2620_v7 = vsel %vm275_vm1, %v1101_v40, %v1102_v27 }
 0x4fa   : > { %1075 = vrot.lane.b32.xlu0 %v2614_v38, %s1598_s15  ;;  %v1037_v17 = vrot.slane %v2614_v38, 7  ;;  %v1103_v9 = vrot.slane %v2614_v38, 1  ;;  %v1054_v55 = vmul.f32 %v2338_v56, %v1039_v24 }
 0x4fb   : > { %1089 = vrot.lane.b32.xlu1 %v2601_v34, %s1599_s17 }
 0x4fc   : > { %v1040_v12 = vsel %vm185_vm0, %v1037_v17, %v1035_v35  ;;  %v1038_v8 = vsel %vm185_vm0, %v1036_v44, %v1037_v17  ;;  %v2634_v18 = vsel %vm275_vm1, %v1102_v27, %v1103_v9  ;;  %v2638_v20 = vsel %vm275_vm1, %v1103_v9, %v1101_v40 }
 0x4fd   : > { %v1053_v54 = vmul.f32 %v2335_v42, %v1040_v12  ;;  %v1055_v10 = vmul.f32 %v2353_v51, %v1038_v8 }
 0x4fe   : > { %1091 = vrot.lane.b32.xlu0 %v2603_v36, %s1599_s17 }
 0x4ff   : > { %1093 = vrot.lane.b32.xlu1 %v2614_v38, %s1599_s17 }
 0x502   : > { %1041 = vrot.lane.b32.xlu0 %v1040_v12, %s1598_s15 }
 0x503   : > { %1043 = vrot.lane.b32.xlu1 %v1039_v24, %s1598_s15 }
 0x506   : > { %1045 = vrot.lane.b32.xlu0 %v1038_v8, %s1598_s15 }
 0x507   : > { %1059 = vrot.lane.b32.xlu1 %v1040_v12, %s1599_s17  ;;  %v1083_v12 = vmul.f32 %v2362_v49, %v2601_v34  ;;  %v1085_v34 = vmul.f32 %v2375_v14, %v2614_v38 }
 0x50a   : > { %1061 = vrot.lane.b32.xlu0 %v1039_v24, %s1599_s17 }
 0x50b   : > { %1063 = vrot.lane.b32.xlu1 %v1038_v8, %s1599_s17 }
 0x50e   : > { %1107 = vrot.lane.b32.xlu0 %v2620_v7, %s1598_s15 }
 0x50f   : > { %1109 = vrot.lane.b32.xlu1 %v2634_v18, %s1598_s15 }
 0x512   : > { %1111 = vrot.lane.b32.xlu0 %v2638_v20, %s1598_s15 }
 0x513   : > { %1125 = vrot.lane.b32.xlu1 %v2620_v7, %s1599_s17 }
 0x516   : > { %1127 = vrot.lane.b32.xlu0 %v2634_v18, %s1599_s17 }
 0x517   : > { %1129 = vrot.lane.b32.xlu1 %v2638_v20, %s1599_s17 }
 0x568   : > { %v1072_v45 = vpop.permute.xlu0 %1071 }
 0x569   : > { %v1074_v26 = vpop.permute.xlu1 %1073  ;;  %v1077_v33 = vmul.f32 %v2350_v60, %v1072_v45 }
 0x56c   : > { %v1076_v41 = vpop.permute.xlu0 %1075 }
 0x56d   : > { %v1090_v59 = vpop.permute.xlu1 %1089 }
 0x56e   : > { %v1095_v45 = vmul.f32 %v2467_v13, %v1090_v59 }
 0x570   : > { %v1092_v48 = vpop.permute.xlu0 %1091 }
 0x571   : > { %v1094_v5 = vpop.permute.xlu1 %1093 }
 0x574   : > { %v1042_v31 = vpop.permute.xlu0 %1041 }
 0x575   : > { %v1044_v43 = vpop.permute.xlu1 %1043  ;;  %v1047_v32 = vmul.f32 %v2329_v0, %v1042_v31  ;;  %v1078_v31 = vmul.f32 %v2356_v11, %v1074_v26  ;;  %v1096_v26 = vmul.f32 %v2478_v62, %v1092_v48  ;;  %v1120_v48 = vmul.f32 %v2384_v58, %v2634_v18 }
 0x576   : > { %v1048_v29 = vmul.f32 %v2332_v4, %v1044_v43  ;;  %v1079_v43 = vmul.f32 %v2370_v19, %v1076_v41  ;;  %v1119_v41 = vmul.f32 %v2481_v46, %v2620_v7  ;;  %v1121_v7 = vmul.f32 %v2499_v3, %v2638_v20 }
 0x577   : > { %v1056_v50 = vadd.f32 %v1053_v54, %v1047_v32 }
 0x578   : > { %v1046_v63 = vpop.permute.xlu0 %1045  ;;  %v1057_v35 = vadd.f32 %v1054_v55, %v1048_v29  ;;  %v1084_v29 = vmul.f32 %v2366_v21, %v2603_v36  ;;  %v1097_v55 = vmul.f32 %v2485_v47, %v1094_v5 }
 0x579   : > { %v1060_v23 = vpop.permute.xlu1 %1059  ;;  %v1049_v28 = vmul.f32 %v2341_v2, %v1046_v63 }
 0x57a   : > { %v1065_v22 = vmul.f32 %v2344_v30, %v1060_v23 }
 0x57b   : > { %v1058_v17 = vadd.f32 %v1055_v10, %v1049_v28 }
 0x57c   : > { %v1068_v52 = vadd.f32 %v1065_v22, %v1056_v50  ;;  %v1062_v53 = vpop.permute.xlu0 %1061 }
 0x57d   : > { %v1064_v40 = vpop.permute.xlu1 %1063  ;;  %v1066_v44 = vmul.f32 %v2347_v57, %v1062_v53 }
 0x57e   : > { %v1080_v27 = vadd.f32 %v1077_v33, %v1068_v52  ;;  %v1067_v9 = vmul.f32 %v2359_v15, %v1064_v40 }
 0x57f   : > { %v1069_v24 = vadd.f32 %v1066_v44, %v1057_v35 }
 0x580   : > { %v1070_v8 = vadd.f32 %v1067_v9, %v1058_v17  ;;  %v1086_v32 = vadd.f32 %v1083_v12, %v1080_v27  ;;  %v1108_v54 = vpop.permute.xlu0 %1107 }
 0x581   : > { %v1081_v63 = vadd.f32 %v1078_v31, %v1069_v24  ;;  %v1110_v23 = vpop.permute.xlu1 %1109  ;;  %v1113_v50 = vmul.f32 %v2473_v61, %v1108_v54 }
 0x582   : > { %v1082_v22 = vadd.f32 %v1079_v43, %v1070_v8  ;;  %v1098_v28 = vadd.f32 %v1095_v45, %v1086_v32  ;;  %v1114_v53 = vmul.f32 %v2488_v6, %v1110_v23 }
 0x583   : > { %v1087_v59 = vadd.f32 %v1084_v29, %v1081_v63 }
 0x584   : > { %v1116_v33 = vadd.f32 %v1113_v50, %v1098_v28  ;;  %v1112_v52 = vpop.permute.xlu0 %1111  ;;  %v1088_v10 = vadd.f32 %v1085_v34, %v1082_v22 }
 0x585   : > { %v1099_v36 = vadd.f32 %v1096_v26, %v1087_v59  ;;  %v1126_v35 = vpop.permute.xlu1 %1125  ;;  %v1115_v40 = vmul.f32 %v2491_v37, %v1112_v52 }
 0x586   : > { %v1122_v44 = vadd.f32 %v1119_v41, %v1116_v33  ;;  %v1131_v38 = vmul.f32 %v2494_v16, %v1126_v35  ;;  %v1100_v27 = vadd.f32 %v1097_v55, %v1088_v10 }
 0x587   : > { %v1117_v17 = vadd.f32 %v1114_v53, %v1099_v36 }
 0x588   : > { %v2693_v5 = vadd.f32 %v1131_v38, %v1122_v44  ;;  %v1118_v9 = vadd.f32 %v1115_v40, %v1100_v27  ;;  %v1128_v12 = vpop.permute.xlu0 %1127 }
 0x589   : > { %v1130_v31 = vpop.permute.xlu1 %1129  ;;  %v1123_v24 = vadd.f32 %v1120_v48, %v1117_v17  ;;  %v1132_v45 = vmul.f32 %v2505_v25, %v1128_v12 }
 0x58a   : > { %v1124_v43 = vadd.f32 %v1121_v7, %v1118_v9  ;;  %v1133_v8 = vmul.f32 %v2508_v39, %v1130_v31  ;;  %1173 = vrot.lane.b32.xlu0 %v2693_v5, %s1598_s15  ;;  %v1137_v20 = vrot.slane %v2693_v5, 7  ;;  %v1203_v63 = vrot.slane %v2693_v5, 1 }
 0x58b   : > { %v2699_v32 = vadd.f32 %v1132_v45, %v1123_v24 }
 0x58c   : > { %v2701_v18 = vadd.f32 %v1133_v8, %v1124_v43 }
 0x58d   : > { %1175 = vrot.lane.b32.xlu1 %v2699_v32, %s1598_s15  ;;  %v1138_v54 = vrot.slane %v2699_v32, 7  ;;  %v1204_v29 = vrot.slane %v2699_v32, 1 }
 0x58e   : > { %1177 = vrot.lane.b32.xlu0 %v2701_v18, %s1598_s15  ;;  %v1139_v23 = vrot.slane %v2701_v18, 7  ;;  %v1205_v50 = vrot.slane %v2701_v18, 1 }
 0x58f   : > { %v1141_v22 = vsel %vm185_vm0, %v1137_v20, %v1138_v54  ;;  %v2717_v28 = vsel %vm275_vm1, %v1203_v63, %v1204_v29 }
 0x590   : > { %v1142_v34 = vsel %vm185_vm0, %v1139_v23, %v1137_v20  ;;  %v1140_v26 = vsel %vm185_vm0, %v1138_v54, %v1139_v23  ;;  %v2725_v59 = vsel %vm275_vm1, %v1204_v29, %v1205_v50  ;;  %v2731_v41 = vsel %vm275_vm1, %v1205_v50, %v1203_v63 }
 0x591   : > { %1191 = vrot.lane.b32.xlu1 %v2693_v5, %s1599_s17  ;;  %v1155_v27 = vmul.f32 %v2335_v42, %v1142_v34  ;;  %v1156_v48 = vmul.f32 %v2338_v56, %v1141_v22 }
 0x592   : > { %1193 = vrot.lane.b32.xlu0 %v2699_v32, %s1599_s17 }
 0x595   : > { %1195 = vrot.lane.b32.xlu1 %v2701_v18, %s1599_s17 }
 0x596   : > { %1143 = vrot.lane.b32.xlu0 %v1142_v34, %s1598_s15 }
 0x599   : > { %1145 = vrot.lane.b32.xlu1 %v1141_v22, %s1598_s15 }
 0x59a   : > { %1147 = vrot.lane.b32.xlu0 %v1140_v26, %s1598_s15 }
 0x59d   : > { %1161 = vrot.lane.b32.xlu1 %v1142_v34, %s1599_s17 }
 0x59e   : > { %1163 = vrot.lane.b32.xlu0 %v1141_v22, %s1599_s17 }
 0x5a1   : > { %1165 = vrot.lane.b32.xlu1 %v1140_v26, %s1599_s17 }
 0x5a2   : > { %1209 = vrot.lane.b32.xlu0 %v2717_v28, %s1598_s15 }
 0x5a5   : > { %1211 = vrot.lane.b32.xlu1 %v2725_v59, %s1598_s15 }
 0x5a6   : > { %1213 = vrot.lane.b32.xlu0 %v2731_v41, %s1598_s15 }
 0x5a9   : > { %1227 = vrot.lane.b32.xlu1 %v2717_v28, %s1599_s17 }
 0x5aa   : > { %1229 = vrot.lane.b32.xlu0 %v2725_v59, %s1599_s17 }
 0x5ad   : > { %1231 = vrot.lane.b32.xlu1 %v2731_v41, %s1599_s17 }
 0x5fc   : > { %v1174_v1 = vpop.permute.xlu0 %1173 }
 0x5fd   : > { %v1179_v43 = vmul.f32 %v2350_v60, %v1174_v1 }
 0x5ff   : > { %v1176_v55 = vpop.permute.xlu1 %1175 }
 0x600   : > { %v1178_v33 = vpop.permute.xlu0 %1177 }
 0x601   : > { %v1181_v60 = vmul.f32 %v2370_v19, %v1178_v33  ;;  %v1221_v19 = vmul.f32 %v2481_v46, %v2717_v28  ;;  %v1222_v33 = vmul.f32 %v2384_v58, %v2725_v59  ;;  %v1223_v46 = vmul.f32 %v2499_v3, %v2731_v41 }
 0x603   : > { %v1192_v52 = vpop.permute.xlu1 %1191 }
 0x604   : > { %v1194_v10 = vpop.permute.xlu0 %1193 }
 0x605   : > { %v1198_v50 = vmul.f32 %v2478_v62, %v1194_v10 }
 0x607   : > { %v1196_v36 = vpop.permute.xlu1 %1195 }
 0x608   : > { %v1144_v53 = vpop.permute.xlu0 %1143 }
 0x609   : > { %v1149_v40 = vmul.f32 %v2329_v0, %v1144_v53  ;;  %v1157_v0 = vmul.f32 %v2353_v51, %v1140_v26  ;;  %v1197_v51 = vmul.f32 %v2467_v13, %v1192_v52  ;;  %v1199_v13 = vmul.f32 %v2485_v47, %v1196_v36 }
 0x60b   : > { %v1146_v35 = vpop.permute.xlu1 %1145  ;;  %v1158_v7 = vadd.f32 %v1155_v27, %v1149_v40 }
 0x60c   : > { %v1148_v44 = vpop.permute.xlu0 %1147  ;;  %v1150_v38 = vmul.f32 %v2332_v4, %v1146_v35  ;;  %v1180_v4 = vmul.f32 %v2356_v11, %v1176_v55 }
 0x60d   : > { %v1151_v9 = vmul.f32 %v2341_v2, %v1148_v44  ;;  %v1185_v2 = vmul.f32 %v2362_v49, %v2693_v5 }
 0x60e   : > { %v1159_v24 = vadd.f32 %v1156_v48, %v1150_v38 }
 0x60f   : > { %v1162_v17 = vpop.permute.xlu1 %1161  ;;  %v1160_v56 = vadd.f32 %v1157_v0, %v1151_v9 }
 0x610   : > { %v1167_v12 = vmul.f32 %v2344_v30, %v1162_v17  ;;  %v1164_v31 = vpop.permute.xlu0 %1163 }
 0x611   : > { %v1168_v45 = vmul.f32 %v2347_v57, %v1164_v31  ;;  %v1186_v57 = vmul.f32 %v2366_v21, %v2699_v32 }
 0x612   : > { %v1170_v8 = vadd.f32 %v1167_v12, %v1158_v7 }
 0x613   : > { %v1171_v42 = vadd.f32 %v1168_v45, %v1159_v24  ;;  %v1166_v20 = vpop.permute.xlu1 %1165 }
 0x614   : > { %v1182_v54 = vadd.f32 %v1179_v43, %v1170_v8  ;;  %v1169_v63 = vmul.f32 %v2359_v15, %v1166_v20  ;;  %v1210_v30 = vpop.permute.xlu0 %1209  ;;  %v1187_v15 = vmul.f32 %v2375_v14, %v2701_v18 }
 0x615   : > { %v1183_v29 = vadd.f32 %v1180_v4, %v1171_v42  ;;  %v1215_v5 = vmul.f32 %v2473_v61, %v1210_v30 }
 0x616   : > { %v1172_v23 = vadd.f32 %v1169_v63, %v1160_v56  ;;  %v1188_v11 = vadd.f32 %v1185_v2, %v1182_v54 }
 0x617   : > { %v1212_v22 = vpop.permute.xlu1 %1211  ;;  %v1189_v34 = vadd.f32 %v1186_v57, %v1183_v29 }
 0x618   : > { %v1184_v26 = vadd.f32 %v1181_v60, %v1172_v23  ;;  %v1200_v49 = vadd.f32 %v1197_v51, %v1188_v11  ;;  %v1216_v1 = vmul.f32 %v2488_v6, %v1212_v22  ;;  %v1214_v21 = vpop.permute.xlu0 %1213 }
 0x619   : > { %v1201_v32 = vadd.f32 %v1198_v50, %v1189_v34  ;;  %v1217_v10 = vmul.f32 %v2491_v37, %v1214_v21 }
 0x61a   : > { %v1218_v55 = vadd.f32 %v1215_v5, %v1200_v49  ;;  %v1190_v62 = vadd.f32 %v1187_v15, %v1184_v26 }
 0x61b   : > { %v1219_v52 = vadd.f32 %v1216_v1, %v1201_v32  ;;  %v1228_v14 = vpop.permute.xlu1 %1227 }
 0x61c   : > { %v1202_v18 = vadd.f32 %v1199_v13, %v1190_v62  ;;  %v1224_v61 = vadd.f32 %v1221_v19, %v1218_v55  ;;  %v1233_v6 = vmul.f32 %v2494_v16, %v1228_v14  ;;  %v1230_v53 = vpop.permute.xlu0 %1229 }
 0x61d   : > { %v1225_v35 = vadd.f32 %v1222_v33, %v1219_v52  ;;  %v1234_v40 = vmul.f32 %v2505_v25, %v1230_v53 }
 0x61e   : > { %v1220_v47 = vadd.f32 %v1217_v10, %v1202_v18  ;;  %v1236_v28 = vadd.f32 %v1233_v6, %v1224_v61 }
 0x61f   : > { %v1237_v36 = vadd.f32 %v1234_v40, %v1225_v35  ;;  %v1232_v44 = vpop.permute.xlu1 %1231 }
 0x620   : > { %v1239_v58 = vsub.f32 0.0, %v1236_v28  ;;  %v1226_v59 = vadd.f32 %v1223_v46, %v1220_v47  ;;  %v1235_v38 = vmul.f32 %v2508_v39, %v1232_v44 }
 0x621   : > { %v1240_v27 = vsub.f32 0.0, %v1237_v36 }
 0x622   : > { %v1242_v37 = vmul.f32 1.442695, %v1239_v58  ;;  %v1238_v48 = vadd.f32 %v1235_v38, %v1226_v59 }
 0x623   : > { %v1244_v16 = vmul.f32 1.442695, %v1240_v27 }
 0x624   : > { %1431 = vpow2.f32 %v1242_v37  ;;  %v1241_v17 = vsub.f32 0.0, %v1238_v48 }
 0x625   : > { %1433 = vpow2.f32 %v1244_v16 }
 0x626   : > { %v1246_v25 = vmul.f32 1.442695, %v1241_v17 }
 0x628   : > { %1435 = vpow2.f32 %v1246_v25 }
 0x631   : > { %v1432_v3 = vpop.eup %1431 }
 0x632   : > { %v1434_v41 = vpop.eup %1433  ;;  %v1248_v7 = vadd.f32 1.0, %v1432_v3 }
 0x633   : > { %v1249_v9 = vadd.f32 1.0, %v1434_v41 }
 0x634   : > { %1437 = vrcp.f32 %v1248_v7 }
 0x635   : > { %v1436_v12 = vpop.eup %1435  ;;  %1439 = vrcp.f32 %v1249_v9 }
 0x636   : > { %v1250_v39 = vadd.f32 1.0, %v1436_v12 }
 0x638   : > { %1441 = vrcp.f32 %v1250_v39 }
 0x641   : > { %v1438_v31 = vpop.eup %1437 }
 0x642   : > { %v1440_v24 = vpop.eup %1439  ;;  %1254 = vst [vmem:[%s176_s26] sm:$0xff] %v1438_v31 }
 0x643   : > { %1255 = vst [vmem:[%s176_s26 + $0x8] sm:$0xff] %v1440_v24 }
 0x645   : > { %v1442_v45 = vpop.eup %1441 }
 0x646   : > { %1256 = vst [vmem:[%s176_s26 + $0x10] sm:$0xff] %v1442_v45 }
 0x647   : > { %1537 = shalt.err (!%p1534_p0)
}
 0x648   : > { %s1538_s5 = scalar_lea.hbm %s2794_s24, 384  ;;  %s1542_s22 = scalar_lea.hbm %s2840_s2, 1152 }
 0x649   : > { %p1539_p10 = scmp.ne.s32.totalorder %s2794_s24, %s1538_s5  ;;  %p1543_p4 = scmp.lt.s32.totalorder %s2794_s24, %s2840_s2 }
 0x64a   : > { %p1544_p6 = scmp.lt.s32.totalorder %s1542_s22, %s1538_s5 }
 0x64b   : > { %p1540_p2 = pnand %p1539_p10, %p2856_p5 }
 0x64c   : > { %p1545_p8 = por %p1544_p6, %p1543_p4 }
 0x64d   : > { %p1541_p1 = pneg %p1540_p2 }
 0x64f   : > { %p1546_p3 = pnand %p1545_p8, %p1541_p1 }
 0x651   : > { %1549 = shalt.err (!%p1546_p3)
}
 0x652   : > { %s1601_s15 = smov 128   ;;  %s1602_s17 = smov 8  }
 0x653   : > { %1374 = dma.vmem_to_hbm [thread:$0]  (%p2856_p5), %s2796_s14, 384, %s2794_s24, %s1258_s13, %s1601_s15, %s1601_s15, %s1602_s17  }
 0x654 PF: > { %p1391_p7 = scmp.ge.s32.totalorder %s1592_s12, 2  ;;  %s1286_s25 = sand.u32 1, %s1580_s9  }
 0x655   : > { %p2857_p9 = scmp.ne.s32.totalorder %s2846_s16, 0  ;;  %s1287_s26 = scalar_lea.sflag [#allocation4], %s1286_s25 }
 0x657   : > { %p1385_p11 = pnand %p1391_p7, %p2857_p9 }
 0x659   : > { %p1386_p12 = pneg %p1385_p11 }
 0x65b   : > { %1575 = dma.done.wait (%p1386_p12), %s1287_s26, 384  }
 0x65c   : > { %1577 = vsyncadd (%p1386_p12), %s1287_s26, 4294966912  ;;  %p16_p13 = scmp.ge.s32.totalorder %s1671_s21, 5   ;;  %s2858_s9 = smov %s1584_s10 }
 0x65d   : > { %s2859_s10 = smov %s1588_s11  ;;  %s2860_s11 = smov %s1691_s29 }
 0x65e   : > { %s2861_s12 = smov %s1671_s21  ;;  %18 = sbr.rel (!%p16_p13) target bundleno = 6 (0x6), region = 85 }
 0x663   :  { %1292 = vsyncpa [#allocation3], 1 }
 0x664   :  { %1294 = vsyncpa [#allocation3 + $0x1], 1 }
 0x665   :  { %1295 = vsyncpa [#allocation6], 1 }
 0x666   :  { %1296 = vsyncpa [#allocation4], 1 }
 0x667   :  { %1298 = vsyncpa [#allocation4 + $0x1], 1 }

</bundles_post_ra>
